<compile_context>
chip_gen: v7x
topology: tpu7x:2x2x1
jax: 0.10.0
libtpu: 0.0.40
codegen_flags: <defaults>
</compile_context>

<pallas_src>
import functools

import jax
import jax.numpy as jnp
from jax.experimental import pallas as pl
from jax.experimental.pallas import tpu as pltpu

LEAK = 0.2
BN_EPS = 1e-5
HARD_LANE_CAP = 65536               # absolute cap on lanes per grid step
STREAM_BUDGET = 12 * 1024 * 1024    # double-buffered streamed bytes per step


# ----------------------------------------------------------------------------
# small static helpers
# ----------------------------------------------------------------------------
def _round_up(x, m):
    return -(-x // m) * m


@functools.lru_cache(maxsize=None)
def _vmem_limit():
    """Generation-aware scoped-VMEM request: ~48 MiB on v7x, 64 MiB on v5e/v6e."""
    try:
        cap = int(pltpu.get_tpu_info().vmem_capacity_bytes)
    except Exception:
        cap = 64 << 20
    return max(32 << 20, min(64 << 20, (cap * 3) // 4))


def _compiler_params(sem):
    return pltpu.CompilerParams(dimension_semantics=sem,
                                vmem_limit_bytes=_vmem_limit())


def _lane_cap(bytes_per_lane):
    """Largest 128-aligned lane tile whose streamed working set fits the budget."""
    cap = max(128, min(HARD_LANE_CAP, STREAM_BUDGET // max(1, bytes_per_lane)))
    return (cap // 128) * 128


def _tiling(m, cap, want_chunks=2):
    """Split M into (nc parallel chunks) x (inner arbitrary steps) of mt lanes.

    Returns (nc, inner, mt, padded_M) with padded_M = nc * inner * mt and
    mt a 128-multiple <= cap.  nc > 1 only when there is enough work to split.
    """
    m128 = _round_up(m, 128)
    nc = want_chunks if m128 >= want_chunks * 2048 else 1
    inner = max(1, -(-m128 // (nc * cap)))
    mt = _round_up(-(-m128 // (nc * inner)), 128)
    return nc, inner, mt, nc * inner * mt


# ----------------------------------------------------------------------------
# Pallas kernels
# ----------------------------------------------------------------------------
def conv_stats_kernel(w_ref, p_ref, y_ref, s_ref, q_ref):
    """conv-as-matmul on one lane tile + BatchNorm statistics accumulation.

    w_ref: (C, K)  bf16 weights (constant index map -> fetched once)
    p_ref: (K, MT) bf16 im2col patches, lane tile of the M = N*H*W axis
    y_ref: (C, MT) bf16 raw conv output tile (streamed out, lane-dense)
    s_ref, q_ref: (C, 1) f32 per-chunk sum / sum-of-squares, resident
                  accumulators across the inner "arbitrary" grid axis.

    NOTE: no bias is added here on purpose -- the exactness of the zero-padded
    patch columns (they contribute nothing to s/q) relies on it, and the
    dropped conv bias is cancelled exactly by BN's mean subtraction.
    """
    @pl.when(pl.program_id(1) == 0)
    def _():
        s_ref[...] = jnp.zeros_like(s_ref)
        q_ref[...] = jnp.zeros_like(q_ref)

    y = jnp.dot(w_ref[...], p_ref[...], preferred_element_type=jnp.float32)
    y_ref[...] = y.astype(y_ref.dtype)
    s_ref[...] += jnp.sum(y, axis=1, keepdims=True)
    q_ref[...] += jnp.sum(y * y, axis=1, keepdims=True)


def bn_lrelu_kernel(y_ref, sc_ref, sh_ref, o_ref):
    """Per-channel affine (folded BatchNorm) + LeakyReLU on a lane tile."""
    v = y_ref[...].astype(jnp.float32) * sc_ref[...] + sh_ref[...]
    o_ref[...] = jnp.where(v > 0, v, LEAK * v).astype(o_ref.dtype)


def bn_lrelu_fc_kernel(x_ref, sc_ref, sh_ref, w_ref, b_ref, o_ref, *,
                       use_sigmoid):
    """Fused BN2 + LeakyReLU + FC (+ sigmoid), feature-major / batch-on-lanes.

    x_ref: (F, NB) bf16 raw conv2 output, features in PyTorch (c, h, w) order
    sc_ref, sh_ref, w_ref: (F, 1) f32 BN scale / BN shift / FC weight column
    b_ref: (1, 1) f32 FC bias
    o_ref: (1, NB) f32 discriminator output (lane-dense store)
    """
    v = x_ref[...].astype(jnp.float32) * sc_ref[...] + sh_ref[...]
    a = jnp.where(v > 0, v, LEAK * v)
    logit = jnp.sum(a * w_ref[...], axis=0, keepdims=True) + b_ref[...]
    if use_sigmoid:
        logit = jax.nn.sigmoid(logit)
    o_ref[...] = logit


# ----------------------------------------------------------------------------
# pallas_call wrappers (grid / BlockSpec plumbing)
# ----------------------------------------------------------------------------
def _conv_stats_call(wm, pm, nc, inner, mt):
    C, K = wm.shape
    _, Mp = pm.shape
    return pl.pallas_call(
        conv_stats_kernel,
        grid=(nc, inner),
        in_specs=[
            pl.BlockSpec((C, K), lambda c, i: (0, 0)),
            pl.BlockSpec((K, mt), lambda c, i: (0, c * inner + i)),
        ],
        out_specs=[
            pl.BlockSpec((C, mt), lambda c, i: (0, c * inner + i)),
            pl.BlockSpec((None, C, 1), lambda c, i: (c, 0, 0)),
            pl.BlockSpec((None, C, 1), lambda c, i: (c, 0, 0)),
        ],
        out_shape=[
            jax.ShapeDtypeStruct((C, Mp), jnp.bfloat16),
            jax.ShapeDtypeStruct((nc, C, 1), jnp.float32),
            jax.ShapeDtypeStruct((nc, C, 1), jnp.float32),
        ],
        # Leading chunk axis is megacore-parallel (per-chunk stats blocks);
        # the inner M axis carries the BN-stat accumulation -> "arbitrary".
        compiler_params=_compiler_params(("parallel", "arbitrary")),
    )(wm, pm)


def _bn_lrelu_call(y, sc, sh, mt):
    C, Mp = y.shape
    return pl.pallas_call(
        bn_lrelu_kernel,
        grid=(Mp // mt,),
        in_specs=[
            pl.BlockSpec((C, mt), lambda i: (0, i)),
            pl.BlockSpec((C, 1), lambda i: (0, 0)),
            pl.BlockSpec((C, 1), lambda i: (0, 0)),
        ],
        out_specs=pl.BlockSpec((C, mt), lambda i: (0, i)),
        out_shape=jax.ShapeDtypeStruct((C, Mp), jnp.bfloat16),
        compiler_params=_compiler_params(("parallel",)),
    )(y, sc, sh)


def _bn_lrelu_fc_call(x2, sc, sh, fw, fb, nb, use_sigmoid):
    F, Np = x2.shape
    kernel = functools.partial(bn_lrelu_fc_kernel, use_sigmoid=use_sigmoid)
    return pl.pallas_call(
        kernel,
        grid=(Np // nb,),
        in_specs=[
            pl.BlockSpec((F, nb), lambda i: (0, i)),
            pl.BlockSpec((F, 1), lambda i: (0, 0)),
            pl.BlockSpec((F, 1), lambda i: (0, 0)),
            pl.BlockSpec((F, 1), lambda i: (0, 0)),
            pl.BlockSpec((1, 1), lambda i: (0, 0)),
        ],
        out_specs=pl.BlockSpec((1, nb), lambda i: (0, i)),
        out_shape=jax.ShapeDtypeStruct((1, Np), jnp.float32),
        compiler_params=_compiler_params(("parallel",)),
    )(x2, sc, sh, fw, fb)


# ----------------------------------------------------------------------------
# Plain-JAX glue: feature-major im2col (static strided slices, no gather).
# Inputs are cast to bf16 BEFORE this runs so the patch tensor is materialized
# exactly once, in bf16.
# ----------------------------------------------------------------------------
def _patches_fm(x, k, s, p, pad_value):
    """x: (C, N, H, W) -> patches (C*k*k, N*Ho*Wo).

    Rows ordered (c, kh, kw) to match PyTorch weight.reshape(C_out, -1);
    columns ordered (n, oh, ow).
    """
    C, N, H, W = x.shape
    Ho = (H + 2 * p - k) // s + 1
    Wo = (W + 2 * p - k) // s + 1
    xp = jnp.pad(x, ((0, 0), (0, 0), (p, p), (p, p)), constant_values=pad_value)
    slabs = []
    for kh in range(k):
        for kw in range(k):
            slabs.append(xp[:, :, kh:kh + s * Ho:s, kw:kw + s * Wo:s])
    pat = jnp.stack(slabs, axis=1)                       # (C, k*k, N, Ho, Wo)
    return pat.reshape(C * k * k, N * Ho * Wo), Ho, Wo


def _pad_cols(a, mp):
    m = a.shape[1]
    if mp != m:
        a = jnp.pad(a, ((0, 0), (0, mp - m)))            # exact zero columns
    return a


def _bn_affine(s, q, m, gamma, beta):
    """Finalize two-pass BN stats (per-chunk partials) into scale/shift (tiny).

    NOTE: variance uses E[y^2] - E[y]^2 in f32; the folded per-channel
    constant (dropped conv bias + normalization fold) inflates the mean, which
    is fine at these magnitudes but worth a Welford pass if weights grow.
    """
    s = jnp.sum(s, axis=0)                               # (C, 1)
    q = jnp.sum(q, axis=0)
    mean = s / m
    var = jnp.maximum(q / m - mean * mean, 0.0)          # biased (train mode)
    scale = gamma.reshape(-1, 1) * jax.lax.rsqrt(var + BN_EPS)
    shift = beta.reshape(-1, 1) - mean * scale
    return scale, shift


# ----------------------------------------------------------------------------
# Discriminator forward
# ----------------------------------------------------------------------------
def discriminator_forward(x, params, use_sigmoid=True):
    """x: (N, 1, 28, 28) float32 NCHW (PyTorch convention) -> (N, 1)."""
    N = x.shape[0]
    C1 = params["conv1_w"].shape[0]       # w
    C2 = params["conv2_w"].shape[0]       # 2w
    bf16 = jnp.bfloat16

    # ---- conv1 + BN1 statistics ---------------------------------------------
    # (x-0.5)/0.5 and the conv1 bias are folded away: weights scaled by 2 and
    # the conv1 input padded with raw 0.5 (== 0 after normalization); the
    # leftover per-channel constant is cancelled exactly by BN's mean subtract.
    w1 = (2.0 * params["conv1_w"].reshape(C1, 16)).astype(bf16)        # (C1, 16)
    x_cm = jnp.transpose(x, (1, 0, 2, 3)).astype(bf16)                 # (1, N, 28, 28) bf16
    p1, H1, W1 = _patches_fm(x_cm, 4, 2, 1, pad_value=0.5)             # (16, N*196) bf16
    M1 = N * H1 * W1
    nc1, in1, mt1, mp1 = _tiling(M1, _lane_cap(4 * (16 + C1)))
    p1 = _pad_cols(p1, mp1)
    y1, s1, q1 = _conv_stats_call(w1, p1, nc1, in1, mt1)               # (C1, mp1)
    scale1, shift1 = _bn_affine(s1, q1, M1, params["bn1_g"], params["bn1_b"])

    # ---- BN1 apply + LeakyReLU -----------------------------------------------
    a1 = _bn_lrelu_call(y1, scale1, shift1, mt1)                       # (C1, mp1)

    # ---- conv2 + BN2 statistics -----------------------------------------------
    w2 = params["conv2_w"].reshape(C2, C1 * 16).astype(bf16)           # (C2, 16*C1)
    a1 = a1[:, :M1].reshape(C1, N, H1, W1)                             # channel-major, stays bf16
    p2, H2, W2 = _patches_fm(a1, 4, 2, 1, pad_value=0.0)               # (16*C1, N*49) bf16
    M2 = N * H2 * W2
    nc2, in2, mt2, mp2 = _tiling(M2, _lane_cap(4 * (C1 * 16 + C2)))
    p2 = _pad_cols(p2, mp2)
    y2, s2, q2 = _conv_stats_call(w2, p2, nc2, in2, mt2)               # (C2, mp2)
    scale2, shift2 = _bn_affine(s2, q2, M2, params["bn2_g"], params["bn2_b"])

    # ---- fused BN2 + LeakyReLU + FC + sigmoid ---------------------------------
    # Feature-major (F, N): batch stays on the lane axis so the output block is
    # a lane-dense (1, nb) slab.  The small (C2, N, HW) -> (F, N) reorder keeps
    # features in PyTorch's (c, h, w) flatten order so fc_w is used unpermuted.
    F = C2 * H2 * W2
    x2 = y2[:, :M2].reshape(C2, N, H2 * W2).transpose(0, 2, 1).reshape(F, N)
    _, _, nb, npad = _tiling(N, _lane_cap(4 * F + 8), want_chunks=1)
    if npad != N:
        x2 = jnp.pad(x2, ((0, 0), (0, npad - N)))
    sc_col = jnp.repeat(scale2[:, 0], H2 * W2).reshape(F, 1)
    sh_col = jnp.repeat(shift2[:, 0], H2 * W2).reshape(F, 1)
    w_col = params["fc_w"].reshape(F, 1).astype(jnp.float32)
    b = params["fc_b"].reshape(1, 1).astype(jnp.float32)
    out_fm = _bn_lrelu_fc_call(x2, sc_col, sh_col, w_col, b, nb, use_sigmoid)
    return jnp.transpose(out_fm[:, :N])                                # (N, 1)


# ----------------------------------------------------------------------------
# Pure-JAX/XLA reference (f32) of the PyTorch module, training-mode BN
# ----------------------------------------------------------------------------
def reference_forward(x, params, use_sigmoid=True):
    def bn(y, g, b):
        m = jnp.mean(y, axis=(0, 2, 3), keepdims=True)
        v = jnp.mean((y - m) ** 2, axis=(0, 2, 3), keepdims=True)
        return ((y - m) * jax.lax.rsqrt(v + BN_EPS) * g[None, :, None, None]
                + b[None, :, None, None])

    def conv(y, w, b):
        y = jax.lax.conv_general_dilated(
            y, w, window_strides=(2, 2), padding=((1, 1), (1, 1)),
            dimension_numbers=("NCHW", "OIHW", "NCHW"))
        return y + b[None, :, None, None]

    y = (x - 0.5) / 0.5
    y = conv(y, params["conv1_w"], params["conv1_b"])
    y = bn(y, params["bn1_g"], params["bn1_b"])
    y = jnp.where(y > 0, y, LEAK * y)
    y = conv(y, params["conv2_w"], params["conv2_b"])
    y = bn(y, params["bn2_g"], params["bn2_b"])
    y = jnp.where(y > 0, y, LEAK * y)
    y = y.reshape(y.shape[0], -1) @ params["fc_w"].T + params["fc_b"]
    return jax.nn.sigmoid(y) if use_sigmoid else y


# ----------------------------------------------------------------------------
# Deterministic synthetic parameters (no checkpoint load)
# ----------------------------------------------------------------------------
def make_params(key, w):
    ks = jax.random.split(key, 10)
    return {
        "conv1_w": 0.1 * jax.random.normal(ks[0], (w, 1, 4, 4), jnp.float32),
        # Conv biases exist in the PyTorch module but are mathematically
        # cancelled by the BN mean subtraction; the Pallas path drops them,
        # the reference keeps them (results must still match).
        "conv1_b": 0.1 * jax.random.normal(ks[1], (w,), jnp.float32),
        "conv2_w": 0.1 * jax.random.normal(ks[2], (2 * w, w, 4, 4), jnp.float32),
        "conv2_b": 0.1 * jax.random.normal(ks[3], (2 * w,), jnp.float32),
        "fc_w": 0.1 * jax.random.normal(ks[4], (1, 2 * w * 7 * 7), jnp.float32),
        "fc_b": 0.1 * jax.random.normal(ks[5], (1,), jnp.float32),
        "bn1_g": 1.0 + 0.1 * jax.random.normal(ks[6], (w,), jnp.float32),
        "bn1_b": 0.1 * jax.random.normal(ks[7], (w,), jnp.float32),
        "bn2_g": 1.0 + 0.1 * jax.random.normal(ks[8], (2 * w,), jnp.float32),
        "bn2_b": 0.1 * jax.random.normal(ks[9], (2 * w,), jnp.float32),
    }


if __name__ == "__main__":
    key = jax.random.PRNGKey(0)
    k_x, k_p = jax.random.split(key)

    w = 4          # finest-level channel count (small)
    batch = 2
    # MNIST-shaped input (N, 1, 28, 28) in [0, 1]
    x = jax.random.uniform(k_x, (batch, 1, 28, 28), jnp.float32)
    params = make_params(k_p, w)

    fwd = jax.jit(discriminator_forward, static_argnames=("use_sigmoid",))
    out = jax.block_until_ready(fwd(x, params, use_sigmoid=True))

    assert out.shape == (batch, 1)
    assert bool(jnp.all(jnp.isfinite(out)))

    # Check against the pure-JAX f32 reference (Pallas path uses bf16 operands
    # with f32 accumulation -> loose tolerance on the sigmoid output).
    ref = reference_forward(x, params, use_sigmoid=True)
    assert float(jnp.max(jnp.abs(out - ref))) < 5e-2

    print("KERNEL_OK")
</pallas_src>

<mosaic_0001>
module attributes {stable_mosaic.version = 11 : i64} {
  func.func @conv_stats_kernel(%arg0: i32, %arg1: i32, %arg2: memref<4x16xbf16, #tpu.memory_space<vmem>>, %arg3: memref<16x512xbf16, #tpu.memory_space<vmem>>, %arg4: memref<4x512xbf16, #tpu.memory_space<vmem>>, %arg5: memref<1x4x1xf32, #tpu.memory_space<vmem>>, %arg6: memref<1x4x1xf32, #tpu.memory_space<vmem>>) attributes {dimension_semantics = [#tpu.dimension_semantics<parallel>, #tpu.dimension_semantics<arbitrary>], iteration_bounds = array<i64: 1, 1>, scalar_prefetch = 0 : i64, scratch_operands = 0 : i64, tpu.core_type = #tpu.core_type<tc>, window_params = [{pipeline_mode = #tpu.pipeline_mode<synchronous>, transform_indices = @transform_0, window_bounds = array<i64: 4, 16>}, {transform_indices = @transform_1, window_bounds = array<i64: 16, 512>}, {transform_indices = @transform_2, window_bounds = array<i64: 4, 512>}, {transform_indices = @transform_3, window_bounds = array<i64: 1, 4, 1>}, {transform_indices = @transform_4, window_bounds = array<i64: 1, 4, 1>}]} {
    %c0_i32 = arith.constant 0 : i32
    %0 = arith.cmpi eq, %arg1, %c0_i32 : i32
    %1 = arith.extui %0 : i1 to i32
    %c0_i32_0 = arith.constant 0 : i32
    %2 = arith.cmpi ne, %1, %c0_i32_0 : i32
    scf.if %2 {
      %cst_20 = arith.constant 0.000000e+00 : f32
      %25 = vector.broadcast %cst_20 : f32 to vector<4x1xf32>
      %c0_21 = arith.constant 0 : index
      %c0_22 = arith.constant 0 : index
      %c0_23 = arith.constant 0 : index
      %26 = vector.load %arg5[%c0_21, %c0_22, %c0_23] : memref<1x4x1xf32, #tpu.memory_space<vmem>>, vector<1x4x1xf32>
      %27 = vector.shape_cast %26 : vector<1x4x1xf32> to vector<4x1xf32>
      %28 = vector.shape_cast %25 : vector<4x1xf32> to vector<1x4x1xf32>
      tpu.vector_store %arg5[%c0_21, %c0_22, %c0_23], %28 {strides = array<i32>} : memref<1x4x1xf32, #tpu.memory_space<vmem>>, vector<1x4x1xf32>,
      %cst_24 = arith.constant 0.000000e+00 : f32
      %29 = vector.broadcast %cst_24 : f32 to vector<4x1xf32>
      %c0_25 = arith.constant 0 : index
      %c0_26 = arith.constant 0 : index
      %c0_27 = arith.constant 0 : index
      %30 = vector.load %arg6[%c0_25, %c0_26, %c0_27] : memref<1x4x1xf32, #tpu.memory_space<vmem>>, vector<1x4x1xf32>
      %31 = vector.shape_cast %30 : vector<1x4x1xf32> to vector<4x1xf32>
      %32 = vector.shape_cast %29 : vector<4x1xf32> to vector<1x4x1xf32>
      tpu.vector_store %arg6[%c0_25, %c0_26, %c0_27], %32 {strides = array<i32>} : memref<1x4x1xf32, #tpu.memory_space<vmem>>, vector<1x4x1xf32>,
    } else {
    }
    %c0 = arith.constant 0 : index
    %c0_1 = arith.constant 0 : index
    %3 = vector.load %arg2[%c0, %c0_1] : memref<4x16xbf16, #tpu.memory_space<vmem>>, vector<4x16xbf16>
    %c0_2 = arith.constant 0 : index
    %c0_3 = arith.constant 0 : index
    %4 = vector.load %arg3[%c0_2, %c0_3] : memref<16x512xbf16, #tpu.memory_space<vmem>>, vector<16x512xbf16>
    %cst = arith.constant dense<0.000000e+00> : vector<4x512xf32>
    %5 = tpu.matmul %3, %4, %cst {dimension_numbers = #tpu.dot_dimension_numbers<[1], [0], [0], [1], [0, 0, 1, 1], [], []>} : vector<4x16xbf16>, vector<16x512xbf16>, vector<4x512xf32> -> vector<4x512xf32>
    %6 = arith.truncf %5 : vector<4x512xf32> to vector<4x512xbf16>
    %c0_4 = arith.constant 0 : index
    %c0_5 = arith.constant 0 : index
    %7 = vector.load %arg4[%c0_4, %c0_5] : memref<4x512xbf16, #tpu.memory_space<vmem>>, vector<4x512xbf16>
    tpu.vector_store %arg4[%c0_4, %c0_5], %6 {strides = array<i32>} : memref<4x512xbf16, #tpu.memory_space<vmem>>, vector<4x512xbf16>,
    %c0_6 = arith.constant 0 : index
    %c0_7 = arith.constant 0 : index
    %c0_8 = arith.constant 0 : index
    %8 = vector.load %arg5[%c0_6, %c0_7, %c0_8] : memref<1x4x1xf32, #tpu.memory_space<vmem>>, vector<1x4x1xf32>
    %9 = vector.shape_cast %8 : vector<1x4x1xf32> to vector<4x1xf32>
    %cst_9 = arith.constant dense<0.000000e+00> : vector<4xf32>
    %10 = vector.multi_reduction <add>, %5, %cst_9 [1] : vector<4x512xf32> to vector<4xf32>
    %11 = vector.shape_cast %10 : vector<4xf32> to vector<4x1xf32>
    %12 = arith.addf %9, %11 : vector<4x1xf32>
    %c0_10 = arith.constant 0 : index
    %c0_11 = arith.constant 0 : index
    %c0_12 = arith.constant 0 : index
    %13 = vector.load %arg5[%c0_10, %c0_11, %c0_12] : memref<1x4x1xf32, #tpu.memory_space<vmem>>, vector<1x4x1xf32>
    %14 = vector.shape_cast %13 : vector<1x4x1xf32> to vector<4x1xf32>
    %15 = vector.shape_cast %12 : vector<4x1xf32> to vector<1x4x1xf32>
    tpu.vector_store %arg5[%c0_10, %c0_11, %c0_12], %15 {strides = array<i32>} : memref<1x4x1xf32, #tpu.memory_space<vmem>>, vector<1x4x1xf32>,
    %c0_13 = arith.constant 0 : index
    %c0_14 = arith.constant 0 : index
    %c0_15 = arith.constant 0 : index
    %16 = vector.load %arg6[%c0_13, %c0_14, %c0_15] : memref<1x4x1xf32, #tpu.memory_space<vmem>>, vector<1x4x1xf32>
    %17 = vector.shape_cast %16 : vector<1x4x1xf32> to vector<4x1xf32>
    %18 = arith.mulf %5, %5 : vector<4x512xf32>
    %cst_16 = arith.constant dense<0.000000e+00> : vector<4xf32>
    %19 = vector.multi_reduction <add>, %18, %cst_16 [1] : vector<4x512xf32> to vector<4xf32>
    %20 = vector.shape_cast %19 : vector<4xf32> to vector<4x1xf32>
    %21 = arith.addf %17, %20 : vector<4x1xf32>
    %c0_17 = arith.constant 0 : index
    %c0_18 = arith.constant 0 : index
    %c0_19 = arith.constant 0 : index
    %22 = vector.load %arg6[%c0_17, %c0_18, %c0_19] : memref<1x4x1xf32, #tpu.memory_space<vmem>>, vector<1x4x1xf32>
    %23 = vector.shape_cast %22 : vector<1x4x1xf32> to vector<4x1xf32>
    %24 = vector.shape_cast %21 : vector<4x1xf32> to vector<1x4x1xf32>
    tpu.vector_store %arg6[%c0_17, %c0_18, %c0_19], %24 {strides = array<i32>} : memref<1x4x1xf32, #tpu.memory_space<vmem>>, vector<1x4x1xf32>,
    return
  }
  func.func @transform_0(%arg0: i32, %arg1: i32) -> (i32, i32) {
    %c0_i32 = arith.constant 0 : i32
    %c0_i32_0 = arith.constant 0 : i32
    %c0_i32_1 = arith.constant 0 : i32
    return %c0_i32, %c0_i32_0 : i32, i32
  }
  func.func @transform_1(%arg0: i32, %arg1: i32) -> (i32, i32) {
    %c1_i32 = arith.constant 1 : i32
    %0 = arith.muli %arg0, %c1_i32 : i32
    %1 = arith.addi %0, %arg1 : i32
    %c0_i32 = arith.constant 0 : i32
    %c0_i32_0 = arith.constant 0 : i32
    return %c0_i32, %1 : i32, i32
  }
  func.func @transform_2(%arg0: i32, %arg1: i32) -> (i32, i32) {
    %c1_i32 = arith.constant 1 : i32
    %0 = arith.muli %arg0, %c1_i32 : i32
    %1 = arith.addi %0, %arg1 : i32
    %c0_i32 = arith.constant 0 : i32
    %c0_i32_0 = arith.constant 0 : i32
    return %c0_i32, %1 : i32, i32
  }
  func.func @transform_3(%arg0: i32, %arg1: i32) -> (i32, i32, i32) {
    %c0_i32 = arith.constant 0 : i32
    %c0_i32_0 = arith.constant 0 : i32
    %c0_i32_1 = arith.constant 0 : i32
    return %arg0, %c0_i32, %c0_i32_0 : i32, i32, i32
  }
  func.func @transform_4(%arg0: i32, %arg1: i32) -> (i32, i32, i32) {
    %c0_i32 = arith.constant 0 : i32
    %c0_i32_0 = arith.constant 0 : i32
    %c0_i32_1 = arith.constant 0 : i32
    return %arg0, %c0_i32, %c0_i32_0 : i32, i32, i32
  }
}

module attributes {stable_mosaic.version = 11 : i64} {
  func.func @bn_lrelu_kernel(%arg0: i32, %arg1: memref<4x512xbf16, #tpu.memory_space<vmem>>, %arg2: memref<4x1xf32, #tpu.memory_space<vmem>>, %arg3: memref<4x1xf32, #tpu.memory_space<vmem>>, %arg4: memref<4x512xbf16, #tpu.memory_space<vmem>>) attributes {dimension_semantics = [#tpu.dimension_semantics<parallel>], iteration_bounds = array<i64: 1>, scalar_prefetch = 0 : i64, scratch_operands = 0 : i64, tpu.core_type = #tpu.core_type<tc>, window_params = [{transform_indices = @transform_0, window_bounds = array<i64: 4, 512>}, {pipeline_mode = #tpu.pipeline_mode<synchronous>, transform_indices = @transform_1, window_bounds = array<i64: 4, 1>}, {pipeline_mode = #tpu.pipeline_mode<synchronous>, transform_indices = @transform_2, window_bounds = array<i64: 4, 1>}, {transform_indices = @transform_3, window_bounds = array<i64: 4, 512>}]} {
    %c0 = arith.constant 0 : index
    %c0_0 = arith.constant 0 : index
    %0 = vector.load %arg1[%c0, %c0_0] : memref<4x512xbf16, #tpu.memory_space<vmem>>, vector<4x512xbf16>
    %1 = arith.extf %0 : vector<4x512xbf16> to vector<4x512xf32>
    %c0_1 = arith.constant 0 : index
    %c0_2 = arith.constant 0 : index
    %2 = vector.load %arg2[%c0_1, %c0_2] : memref<4x1xf32, #tpu.memory_space<vmem>>, vector<4x1xf32>
    %3 = vector.broadcast %2 : vector<4x1xf32> to vector<4x512xf32>
    %4 = arith.mulf %1, %3 : vector<4x512xf32>
    %c0_3 = arith.constant 0 : index
    %c0_4 = arith.constant 0 : index
    %5 = vector.load %arg3[%c0_3, %c0_4] : memref<4x1xf32, #tpu.memory_space<vmem>>, vector<4x1xf32>
    %6 = vector.broadcast %5 : vector<4x1xf32> to vector<4x512xf32>
    %7 = arith.addf %4, %6 : vector<4x512xf32>
    %cst = arith.constant 0.000000e+00 : f32
    %8 = vector.broadcast %cst : f32 to vector<4x512xf32>
    %9 = arith.cmpf ogt, %7, %8 : vector<4x512xf32>
    %cst_5 = arith.constant 2.000000e-01 : f32
    %10 = vector.broadcast %cst_5 : f32 to vector<4x512xf32>
    %11 = arith.mulf %10, %7 : vector<4x512xf32>
    %12 = arith.select %9, %7, %11 : vector<4x512xi1>, vector<4x512xf32>
    %13 = arith.truncf %12 : vector<4x512xf32> to vector<4x512xbf16>
    %c0_6 = arith.constant 0 : index
    %c0_7 = arith.constant 0 : index
    %14 = vector.load %arg4[%c0_6, %c0_7] : memref<4x512xbf16, #tpu.memory_space<vmem>>, vector<4x512xbf16>
    tpu.vector_store %arg4[%c0_6, %c0_7], %13 {strides = array<i32>} : memref<4x512xbf16, #tpu.memory_space<vmem>>, vector<4x512xbf16>,
    return
  }
  func.func @transform_0(%arg0: i32) -> (i32, i32) {
    %c0_i32 = arith.constant 0 : i32
    %c0_i32_0 = arith.constant 0 : i32
    return %c0_i32, %arg0 : i32, i32
  }
  func.func @transform_1(%arg0: i32) -> (i32, i32) {
    %c0_i32 = arith.constant 0 : i32
    %c0_i32_0 = arith.constant 0 : i32
    %c0_i32_1 = arith.constant 0 : i32
    return %c0_i32, %c0_i32_0 : i32, i32
  }
  func.func @transform_2(%arg0: i32) -> (i32, i32) {
    %c0_i32 = arith.constant 0 : i32
    %c0_i32_0 = arith.constant 0 : i32
    %c0_i32_1 = arith.constant 0 : i32
    return %c0_i32, %c0_i32_0 : i32, i32
  }
  func.func @transform_3(%arg0: i32) -> (i32, i32) {
    %c0_i32 = arith.constant 0 : i32
    %c0_i32_0 = arith.constant 0 : i32
    return %c0_i32, %arg0 : i32, i32
  }
}

module attributes {stable_mosaic.version = 11 : i64} {
  func.func @conv_stats_kernel(%arg0: i32, %arg1: i32, %arg2: memref<8x64xbf16, #tpu.memory_space<vmem>>, %arg3: memref<64x128xbf16, #tpu.memory_space<vmem>>, %arg4: memref<8x128xbf16, #tpu.memory_space<vmem>>, %arg5: memref<1x8x1xf32, #tpu.memory_space<vmem>>, %arg6: memref<1x8x1xf32, #tpu.memory_space<vmem>>) attributes {dimension_semantics = [#tpu.dimension_semantics<parallel>, #tpu.dimension_semantics<arbitrary>], iteration_bounds = array<i64: 1, 1>, scalar_prefetch = 0 : i64, scratch_operands = 0 : i64, tpu.core_type = #tpu.core_type<tc>, window_params = [{pipeline_mode = #tpu.pipeline_mode<synchronous>, transform_indices = @transform_0, window_bounds = array<i64: 8, 64>}, {transform_indices = @transform_1, window_bounds = array<i64: 64, 128>}, {transform_indices = @transform_2, window_bounds = array<i64: 8, 128>}, {transform_indices = @transform_3, window_bounds = array<i64: 1, 8, 1>}, {transform_indices = @transform_4, window_bounds = array<i64: 1, 8, 1>}]} {
    %c0_i32 = arith.constant 0 : i32
    %0 = arith.cmpi eq, %arg1, %c0_i32 : i32
    %1 = arith.extui %0 : i1 to i32
    %c0_i32_0 = arith.constant 0 : i32
    %2 = arith.cmpi ne, %1, %c0_i32_0 : i32
    scf.if %2 {
      %cst_20 = arith.constant 0.000000e+00 : f32
      %25 = vector.broadcast %cst_20 : f32 to vector<8x1xf32>
      %c0_21 = arith.constant 0 : index
      %c0_22 = arith.constant 0 : index
      %c0_23 = arith.constant 0 : index
      %26 = vector.load %arg5[%c0_21, %c0_22, %c0_23] : memref<1x8x1xf32, #tpu.memory_space<vmem>>, vector<1x8x1xf32>
      %27 = vector.shape_cast %26 : vector<1x8x1xf32> to vector<8x1xf32>
      %28 = vector.shape_cast %25 : vector<8x1xf32> to vector<1x8x1xf32>
      tpu.vector_store %arg5[%c0_21, %c0_22, %c0_23], %28 {strides = array<i32>} : memref<1x8x1xf32, #tpu.memory_space<vmem>>, vector<1x8x1xf32>,
      %cst_24 = arith.constant 0.000000e+00 : f32
      %29 = vector.broadcast %cst_24 : f32 to vector<8x1xf32>
      %c0_25 = arith.constant 0 : index
      %c0_26 = arith.constant 0 : index
      %c0_27 = arith.constant 0 : index
      %30 = vector.load %arg6[%c0_25, %c0_26, %c0_27] : memref<1x8x1xf32, #tpu.memory_space<vmem>>, vector<1x8x1xf32>
      %31 = vector.shape_cast %30 : vector<1x8x1xf32> to vector<8x1xf32>
      %32 = vector.shape_cast %29 : vector<8x1xf32> to vector<1x8x1xf32>
      tpu.vector_store %arg6[%c0_25, %c0_26, %c0_27], %32 {strides = array<i32>} : memref<1x8x1xf32, #tpu.memory_space<vmem>>, vector<1x8x1xf32>,
    } else {
    }
    %c0 = arith.constant 0 : index
    %c0_1 = arith.constant 0 : index
    %3 = vector.load %arg2[%c0, %c0_1] : memref<8x64xbf16, #tpu.memory_space<vmem>>, vector<8x64xbf16>
    %c0_2 = arith.constant 0 : index
    %c0_3 = arith.constant 0 : index
    %4 = vector.load %arg3[%c0_2, %c0_3] : memref<64x128xbf16, #tpu.memory_space<vmem>>, vector<64x128xbf16>
    %cst = arith.constant dense<0.000000e+00> : vector<8x128xf32>
    %5 = tpu.matmul %3, %4, %cst {dimension_numbers = #tpu.dot_dimension_numbers<[1], [0], [0], [1], [0, 0, 1, 1], [], []>} : vector<8x64xbf16>, vector<64x128xbf16>, vector<8x128xf32> -> vector<8x128xf32>
    %6 = arith.truncf %5 : vector<8x128xf32> to vector<8x128xbf16>
    %c0_4 = arith.constant 0 : index
    %c0_5 = arith.constant 0 : index
    %7 = vector.load %arg4[%c0_4, %c0_5] : memref<8x128xbf16, #tpu.memory_space<vmem>>, vector<8x128xbf16>
    tpu.vector_store %arg4[%c0_4, %c0_5], %6 {strides = array<i32>} : memref<8x128xbf16, #tpu.memory_space<vmem>>, vector<8x128xbf16>,
    %c0_6 = arith.constant 0 : index
    %c0_7 = arith.constant 0 : index
    %c0_8 = arith.constant 0 : index
    %8 = vector.load %arg5[%c0_6, %c0_7, %c0_8] : memref<1x8x1xf32, #tpu.memory_space<vmem>>, vector<1x8x1xf32>
    %9 = vector.shape_cast %8 : vector<1x8x1xf32> to vector<8x1xf32>
    %cst_9 = arith.constant dense<0.000000e+00> : vector<8xf32>
    %10 = vector.multi_reduction <add>, %5, %cst_9 [1] : vector<8x128xf32> to vector<8xf32>
    %11 = vector.shape_cast %10 : vector<8xf32> to vector<8x1xf32>
    %12 = arith.addf %9, %11 : vector<8x1xf32>
    %c0_10 = arith.constant 0 : index
    %c0_11 = arith.constant 0 : index
    %c0_12 = arith.constant 0 : index
    %13 = vector.load %arg5[%c0_10, %c0_11, %c0_12] : memref<1x8x1xf32, #tpu.memory_space<vmem>>, vector<1x8x1xf32>
    %14 = vector.shape_cast %13 : vector<1x8x1xf32> to vector<8x1xf32>
    %15 = vector.shape_cast %12 : vector<8x1xf32> to vector<1x8x1xf32>
    tpu.vector_store %arg5[%c0_10, %c0_11, %c0_12], %15 {strides = array<i32>} : memref<1x8x1xf32, #tpu.memory_space<vmem>>, vector<1x8x1xf32>,
    %c0_13 = arith.constant 0 : index
    %c0_14 = arith.constant 0 : index
    %c0_15 = arith.constant 0 : index
    %16 = vector.load %arg6[%c0_13, %c0_14, %c0_15] : memref<1x8x1xf32, #tpu.memory_space<vmem>>, vector<1x8x1xf32>
    %17 = vector.shape_cast %16 : vector<1x8x1xf32> to vector<8x1xf32>
    %18 = arith.mulf %5, %5 : vector<8x128xf32>
    %cst_16 = arith.constant dense<0.000000e+00> : vector<8xf32>
    %19 = vector.multi_reduction <add>, %18, %cst_16 [1] : vector<8x128xf32> to vector<8xf32>
    %20 = vector.shape_cast %19 : vector<8xf32> to vector<8x1xf32>
    %21 = arith.addf %17, %20 : vector<8x1xf32>
    %c0_17 = arith.constant 0 : index
    %c0_18 = arith.constant 0 : index
    %c0_19 = arith.constant 0 : index
    %22 = vector.load %arg6[%c0_17, %c0_18, %c0_19] : memref<1x8x1xf32, #tpu.memory_space<vmem>>, vector<1x8x1xf32>
    %23 = vector.shape_cast %22 : vector<1x8x1xf32> to vector<8x1xf32>
    %24 = vector.shape_cast %21 : vector<8x1xf32> to vector<1x8x1xf32>
    tpu.vector_store %arg6[%c0_17, %c0_18, %c0_19], %24 {strides = array<i32>} : memref<1x8x1xf32, #tpu.memory_space<vmem>>, vector<1x8x1xf32>,
    return
  }
  func.func @transform_0(%arg0: i32, %arg1: i32) -> (i32, i32) {
    %c0_i32 = arith.constant 0 : i32
    %c0_i32_0 = arith.constant 0 : i32
    %c0_i32_1 = arith.constant 0 : i32
    return %c0_i32, %c0_i32_0 : i32, i32
  }
  func.func @transform_1(%arg0: i32, %arg1: i32) -> (i32, i32) {
    %c1_i32 = arith.constant 1 : i32
    %0 = arith.muli %arg0, %c1_i32 : i32
    %1 = arith.addi %0, %arg1 : i32
    %c0_i32 = arith.constant 0 : i32
    %c0_i32_0 = arith.constant 0 : i32
    return %c0_i32, %1 : i32, i32
  }
  func.func @transform_2(%arg0: i32, %arg1: i32) -> (i32, i32) {
    %c1_i32 = arith.constant 1 : i32
    %0 = arith.muli %arg0, %c1_i32 : i32
    %1 = arith.addi %0, %arg1 : i32
    %c0_i32 = arith.constant 0 : i32
    %c0_i32_0 = arith.constant 0 : i32
    return %c0_i32, %1 : i32, i32
  }
  func.func @transform_3(%arg0: i32, %arg1: i32) -> (i32, i32, i32) {
    %c0_i32 = arith.constant 0 : i32
    %c0_i32_0 = arith.constant 0 : i32
    %c0_i32_1 = arith.constant 0 : i32
    return %arg0, %c0_i32, %c0_i32_0 : i32, i32, i32
  }
  func.func @transform_4(%arg0: i32, %arg1: i32) -> (i32, i32, i32) {
    %c0_i32 = arith.constant 0 : i32
    %c0_i32_0 = arith.constant 0 : i32
    %c0_i32_1 = arith.constant 0 : i32
    return %arg0, %c0_i32, %c0_i32_0 : i32, i32, i32
  }
}

module attributes {stable_mosaic.version = 11 : i64} {
  func.func @bn_lrelu_fc_kernel(%arg0: i32, %arg1: memref<392x128xbf16, #tpu.memory_space<vmem>>, %arg2: memref<392x1xf32, #tpu.memory_space<vmem>>, %arg3: memref<392x1xf32, #tpu.memory_space<vmem>>, %arg4: memref<392x1xf32, #tpu.memory_space<vmem>>, %arg5: memref<1x1xf32, #tpu.memory_space<vmem>>, %arg6: memref<1x128xf32, #tpu.memory_space<vmem>>) attributes {dimension_semantics = [#tpu.dimension_semantics<parallel>], iteration_bounds = array<i64: 1>, scalar_prefetch = 0 : i64, scratch_operands = 0 : i64, tpu.core_type = #tpu.core_type<tc>, window_params = [{transform_indices = @transform_0, window_bounds = array<i64: 392, 128>}, {pipeline_mode = #tpu.pipeline_mode<synchronous>, transform_indices = @transform_1, window_bounds = array<i64: 392, 1>}, {pipeline_mode = #tpu.pipeline_mode<synchronous>, transform_indices = @transform_2, window_bounds = array<i64: 392, 1>}, {pipeline_mode = #tpu.pipeline_mode<synchronous>, transform_indices = @transform_3, window_bounds = array<i64: 392, 1>}, {pipeline_mode = #tpu.pipeline_mode<synchronous>, transform_indices = @transform_4, window_bounds = array<i64: 1, 1>}, {transform_indices = @transform_5, window_bounds = array<i64: 1, 128>}]} {
    %c0 = arith.constant 0 : index
    %c0_0 = arith.constant 0 : index
    %0 = vector.load %arg1[%c0, %c0_0] : memref<392x128xbf16, #tpu.memory_space<vmem>>, vector<392x128xbf16>
    %1 = arith.extf %0 : vector<392x128xbf16> to vector<392x128xf32>
    %c0_1 = arith.constant 0 : index
    %c0_2 = arith.constant 0 : index
    %2 = vector.load %arg2[%c0_1, %c0_2] : memref<392x1xf32, #tpu.memory_space<vmem>>, vector<392x1xf32>
    %3 = vector.broadcast %2 : vector<392x1xf32> to vector<392x128xf32>
    %4 = arith.mulf %1, %3 : vector<392x128xf32>
    %c0_3 = arith.constant 0 : index
    %c0_4 = arith.constant 0 : index
    %5 = vector.load %arg3[%c0_3, %c0_4] : memref<392x1xf32, #tpu.memory_space<vmem>>, vector<392x1xf32>
    %6 = vector.broadcast %5 : vector<392x1xf32> to vector<392x128xf32>
    %7 = arith.addf %4, %6 : vector<392x128xf32>
    %cst = arith.constant 0.000000e+00 : f32
    %8 = vector.broadcast %cst : f32 to vector<392x128xf32>
    %9 = arith.cmpf ogt, %7, %8 : vector<392x128xf32>
    %cst_5 = arith.constant 2.000000e-01 : f32
    %10 = vector.broadcast %cst_5 : f32 to vector<392x128xf32>
    %11 = arith.mulf %10, %7 : vector<392x128xf32>
    %12 = arith.select %9, %7, %11 : vector<392x128xi1>, vector<392x128xf32>
    %c0_6 = arith.constant 0 : index
    %c0_7 = arith.constant 0 : index
    %13 = vector.load %arg4[%c0_6, %c0_7] : memref<392x1xf32, #tpu.memory_space<vmem>>, vector<392x1xf32>
    %14 = vector.broadcast %13 : vector<392x1xf32> to vector<392x128xf32>
    %15 = arith.mulf %12, %14 : vector<392x128xf32>
    %cst_8 = arith.constant dense<0.000000e+00> : vector<128xf32>
    %16 = vector.multi_reduction <add>, %15, %cst_8 [0] : vector<392x128xf32> to vector<128xf32>
    %17 = vector.shape_cast %16 : vector<128xf32> to vector<1x128xf32>
    %c0_9 = arith.constant 0 : index
    %c0_10 = arith.constant 0 : index
    %18 = vector.load %arg5[%c0_9, %c0_10] : memref<1x1xf32, #tpu.memory_space<vmem>>, vector<1x1xf32>
    %19 = vector.broadcast %18 : vector<1x1xf32> to vector<1x128xf32>
    %20 = arith.addf %17, %19 : vector<1x128xf32>
    %21 = arith.negf %20 : vector<1x128xf32>
    %22 = math.exp %21 : vector<1x128xf32>
    %cst_11 = arith.constant 1.000000e+00 : f32
    %23 = vector.broadcast %cst_11 : f32 to vector<1x128xf32>
    %24 = arith.addf %23, %22 : vector<1x128xf32>
    %25 = arith.divf %23, %24 : vector<1x128xf32>
    %c0_12 = arith.constant 0 : index
    %c0_13 = arith.constant 0 : index
    %26 = vector.load %arg6[%c0_12, %c0_13] : memref<1x128xf32, #tpu.memory_space<vmem>>, vector<1x128xf32>
    tpu.vector_store %arg6[%c0_12, %c0_13], %25 {strides = array<i32>} : memref<1x128xf32, #tpu.memory_space<vmem>>, vector<1x128xf32>,
    return
  }
  func.func @transform_0(%arg0: i32) -> (i32, i32) {
    %c0_i32 = arith.constant 0 : i32
    %c0_i32_0 = arith.constant 0 : i32
    return %c0_i32, %arg0 : i32, i32
  }
  func.func @transform_1(%arg0: i32) -> (i32, i32) {
    %c0_i32 = arith.constant 0 : i32
    %c0_i32_0 = arith.constant 0 : i32
    %c0_i32_1 = arith.constant 0 : i32
    return %c0_i32, %c0_i32_0 : i32, i32
  }
  func.func @transform_2(%arg0: i32) -> (i32, i32) {
    %c0_i32 = arith.constant 0 : i32
    %c0_i32_0 = arith.constant 0 : i32
    %c0_i32_1 = arith.constant 0 : i32
    return %c0_i32, %c0_i32_0 : i32, i32
  }
  func.func @transform_3(%arg0: i32) -> (i32, i32) {
    %c0_i32 = arith.constant 0 : i32
    %c0_i32_0 = arith.constant 0 : i32
    %c0_i32_1 = arith.constant 0 : i32
    return %c0_i32, %c0_i32_0 : i32, i32
  }
  func.func @transform_4(%arg0: i32) -> (i32, i32) {
    %c0_i32 = arith.constant 0 : i32
    %c0_i32_0 = arith.constant 0 : i32
    %c0_i32_1 = arith.constant 0 : i32
    return %c0_i32, %c0_i32_0 : i32, i32
  }
  func.func @transform_5(%arg0: i32) -> (i32, i32) {
    %c0_i32 = arith.constant 0 : i32
    %c0_i32_0 = arith.constant 0 : i32
    return %c0_i32, %arg0 : i32, i32
  }
}

</mosaic_0001>

<bundles_post_ra>
// kernel: discriminator_forward.5
= control target key start
LH: loop header
LB: loop body
LE: loop exit
PB: predicated region body
PF: predicated region fallthrough
CT: control target
= control target key end

     0   :  { %v96_v0 = vmov 0   ;;  %v97_v3 = vmov 839922192   ;;  %v25_v5 = vlaneseq  ;;  %v98_v14 = vmov 1983009808   ;;  %s131_s1 = inlined_call_operand.vmem [shape: f32[4,1], index: 1, kind: input, shape index: {}]   ;;  %s132_s2 = inlined_call_operand.vmem [shape: f32[4,1], index: 2, kind: input, shape index: {}]   ;;  %s133_s0 = inlined_call_operand.vmem [shape: bf16[4,512], index: 0, kind: input, shape index: {}]   ;;  %s134_s3 = inlined_call_operand.vmem [shape: bf16[4,512], index: 3, kind: output, shape index: {}]  }
   0x1   :  { %95 = vset.pattern.permute.xlu0 %v96_v0  ;;  %v17_v1 = vld [vmem:[%s131_s1] sm:$0xf]  ;;  %v23_v4 = vunpack.c.l.s4 %v97_v3  ;;  %v70_v15 = vunpack.c.l.s4 %v98_v14 }
   0x2   :  { %20 = vperm.xlu0 %95, %v17_v1   ;;  %v32_v2 = vld [vmem:[%s132_s2] sm:$0xf]  ;;  %v26_v7 = vshrl.u32 %v25_v5, 7 }
   0x3   :  { %v24_v6 = vunpack.c.0.s8 %v23_v4  ;;  %v14_v9 = vld [vmem:[%s133_s0] sm:$0xff]  ;;  %v71_v22 = vunpack.c.0.s8 %v70_v15 }
   0x4   :  { %v15_v11 = vunpack.c.l.bf16 %v14_v9  ;;  %v16_v12 = vunpack.c.h.bf16 %v14_v9 }
   0x5   :  { %v27_v8 = vsub.s32 %v24_v6, %v26_v7  ;;  %v74_v27 = vsub.s32 %v71_v22, %v26_v7 }
   0x6   :  { %35 = vperm.xlu0 %95, %v32_v2  }
  0x81   :  { %v21_v10 = vpop.permute.xlu0 %20 }
  0x82   :  { %v28_v13 = vrot.slane %v21_v10, %v27_v8 }
  0x84   :  { %v30_v17 = vmul.f32 %v28_v13, %v15_v11  ;;  %v31_v18 = vmul.f32 %v28_v13, %v16_v12 }
  0x85   :  { %v36_v16 = vpop.permute.xlu0 %35 }
  0x86   :  { %v43_v19 = vrot.slane %v36_v16, %v27_v8 }
  0x88   :  { %v45_v20 = vadd.f32 %v43_v19, %v30_v17  ;;  %v46_v21 = vadd.f32 %v43_v19, %v31_v18 }
  0x8a   :  { %vm47_vm0 = vcmp.gt.f32.partialorder %v45_v20, 0.0  ;;  %vm48_vm1 = vcmp.gt.f32.partialorder %v46_v21, 0.0  ;;  %v49_v23 = vmul.f32 0.2, %v45_v20  ;;  %v50_v24 = vmul.f32 0.2, %v46_v21 }
  0x8c   :  { %v51_v25 = vsel %vm47_vm0, %v45_v20, %v49_v23  ;;  %v52_v26 = vsel %vm48_vm1, %v46_v21, %v50_v24 }
  0x8d   :  { %v55_v28 = vcombine.high %v51_v25, %v51_v25  ;;  %v56_v29 = vcombine.high %v52_v26, %v52_v26 }
  0x8f   :  { %v90_v30 = vpack.c.bf16 %v55_v28, %v51_v25  ;;  %v91_v31 = vpack.c.bf16 %v56_v29, %v52_v26 }
  0x91   :  { %v75_v32 = vrot.slane %v90_v30, %v74_v27  ;;  %v82_v33 = vrot.slane %v91_v31, %v74_v27 }
  0x93   :  { %v83_v34 = vcombine.low %v75_v32, %v82_v33 }
  0x95   :  { %85 = vst [vmem:[%s134_s3] sm:$0xff] %v83_v34 }

// kernel: discriminator_forward.4
= control target key start
LH: loop header
LB: loop body
LE: loop exit
PB: predicated region body
PF: predicated region fallthrough
CT: control target
= control target key end

     0   :  { %v283_v1 = vmov 0   ;;  %vm83_vm0 = vcmask 130048   ;;  %vm55_vm1 = vcmask 3072   ;;  %v284_v6 = vmov 0.0   ;;  %s359_s1 = inlined_call_operand.vmem [shape: bf16[16,512], index: 1, kind: input, shape index: {}]   ;;  %s360_s0 = inlined_call_operand.vmem [shape: bf16[4,16], index: 0, kind: input, shape index: {}]   ;;  %s361_s3 = inlined_call_operand.vmem [shape: f32[1,4,1], index: 3, kind: output, shape index: {1}]   ;;  %s362_s2 = inlined_call_operand.vmem [shape: bf16[4,512], index: 2, kind: output, shape index: {0}]   ;;  %s363_s4 = inlined_call_operand.vmem [shape: f32[1,4,1], index: 4, kind: output, shape index: {2}]  }
   0x1   :  { %v277_v0 = vld [vmem:[%s359_s1 + $0x4] ss:$16 sps:$4 sm:$0xff]   ;;  %119 = vmatprep.mubr.bf16.mxu0 %v283_v1  ;;  %160 = vmatprep.mubr.bf16.mxu1 %v283_v1  ;;  %v279_v2 = vld [vmem:[%s359_s1 + $0xc] ss:$16 sps:$4 sm:$0xff]   ;;  %v281_v3 = vld [vmem:[%s359_s1] ss:$16 sps:$4 sm:$0xff]   ;;  %v182_v9 = vlaneseq }
   0x2   :  { %87 = vmatprep.subr.bf16.mxu0 %v277_v0  ;;  %v282_v4 = vld [vmem:[%s359_s1 + $0x8] ss:$16 sps:$4 sm:$0xff]   ;;  %128 = vmatprep.subr.bf16.mxu1 %v279_v2  ;;  %v58_v5 = vld [vmem:[%s360_s0] sm:$0x3]  ;;  %56 = vst.msk [vmem:[%s361_s3] sm:$0xf] %vm55_vm1, %v284_v6 }
   0x3   :  { %88 = vmatpush1.bf16.msra.mxu0 %v281_v3  ;;  %129 = vmatpush1.bf16.msra.mxu1 %v282_v4  ;;  %v285_v7 = vmov 1983009808   ;;  %v183_v11 = vshrl.u32 %v182_v9, 7  ;;  %vm197_vm2 = vcmask 1043456   ;;  %57 = vst.msk [vmem:[%s363_s4] sm:$0xf] %vm55_vm1, %v284_v6 }
   0x4   :  { %v180_v8 = vunpack.c.l.s4 %v285_v7 }
   0x6   :  { %270 = vmatmul.mubr.msk.bf16.vlgmr.msra.gmra.mrb[0].mxu0 %vm83_vm0, %v58_v5  ;;  %271 = vmatmul.mubr.msk.bf16.vlgmr.msra.gmra.mrb[0].mxu1 %vm83_vm0, %v58_v5  ;;  %v181_v10 = vunpack.c.0.s8 %v180_v8 }
   0x8   :  { %v184_v14 = vsub.s32 %v181_v10, %v183_v11 }
   0x9   :  { %v196_v44 = vld [vmem:[%s361_s3] sm:$0xf] }
   0xa   :  { %v210_v47 = vld [vmem:[%s363_s4] sm:$0xf] }
  0xd9   :  { %v121_v12 = vpop.f32.mrb[0].mxu0  ;;  %v162_v13 = vpop.f32.mrb[0].mxu1 }
  0xda   :  { %v198_v15 = vsel %vm197_vm2, %v121_v12, 0.0  ;;  %v211_v16 = vmul.f32 %v121_v12, %v121_v12  ;;  %v213_v17 = vmul.f32 %v162_v13, %v162_v13  ;;  %v123_v18 = vpop.f32.mrb[1].mxu0  ;;  %v164_v19 = vpop.f32.mrb[1].mxu1  ;;  %v201_v20 = vsel %vm197_vm2, %v162_v13, 0.0 }
  0xdb   :  { %v272_v21 = vpack.c.bf16 %v123_v18, %v121_v12  ;;  %v199_v22 = vsel %vm197_vm2, %v123_v18, 0.0  ;;  %v212_v23 = vmul.f32 %v123_v18, %v123_v18  ;;  %v273_v24 = vpack.c.bf16 %v164_v19, %v162_v13  ;;  %v125_v25 = vpop.f32.mrb[2].mxu0  ;;  %v166_v26 = vpop.f32.mrb[2].mxu1 }
  0xdc   :  { %v215_v27 = vsel %vm197_vm2, %v211_v16, 0.0  ;;  %v214_v28 = vmul.f32 %v164_v19, %v164_v19  ;;  %v126_v29 = vpop.f32.mrb[3].mxu0  ;;  %v167_v30 = vpop.f32.mrb[3].mxu1  ;;  %v200_v31 = vadd.f32 %v199_v22, %v198_v15  ;;  %v218_v35 = vsel %vm197_vm2, %v213_v17, 0.0 }
  0xdd   :  { %v185_v32 = vrot.slane %v272_v21, %v184_v14  ;;  %v216_v33 = vsel %vm197_vm2, %v212_v23, 0.0  ;;  %v192_v34 = vrot.slane %v273_v24, %v184_v14  ;;  %v203_v39 = vsel %vm197_vm2, %v164_v19, 0.0 }
  0xde   :  { %v202_v36 = vadd.f32 %v201_v20, %v200_v31  ;;  %v217_v37 = vadd.f32 %v216_v33, %v215_v27  ;;  %v220_v42 = vsel %vm197_vm2, %v214_v28, 0.0 }
  0xdf   :  { %v193_v38 = vcombine.low %v185_v32, %v192_v34 }
  0xe0   :  { %v204_v40 = vadd.f32 %v203_v39, %v202_v36  ;;  %v219_v41 = vadd.f32 %v218_v35, %v217_v37 }
  0xe1   :  { %195 = vst [vmem:[%s362_s2] sm:$0xff] %v193_v38 }
  0xe2   :  { %205 = vadd.xlane.f32.xlu0 %v204_v40  ;;  %v221_v43 = vadd.f32 %v220_v42, %v219_v41 }
  0xe6   :  { %222 = vadd.xlane.f32.xlu0 %v221_v43 }
 0x16f   :  { %v206_v45 = vpop.xlane.xlu0 %205 }
 0x170   :  { %v207_v46 = vadd.f32 %v206_v45, %v196_v44 }
 0x172   :  { %209 = vst.msk [vmem:[%s361_s3] sm:$0xf] %vm55_vm1, %v207_v46 }
 0x173   :  { %v223_v48 = vpop.xlane.xlu0 %222 }
 0x174   :  { %v224_v49 = vadd.f32 %v223_v48, %v210_v47 }
 0x176   :  { %225 = vst.msk [vmem:[%s363_s4] sm:$0xf] %vm55_vm1, %v224_v49 }

// kernel: discriminator_forward.6
= control target key start
LH: loop header
LB: loop body
LE: loop exit
PB: predicated region body
PF: predicated region fallthrough
CT: control target
= control target key end

     0   :  { %v206_v0 = vmov 0.0   ;;  %vm207_vm0 = vmmov 0   ;;  %vm83_vm1 = vcmask 523264   ;;  %vm47_vm2 = vcmask 7168   ;;  %s273_s1 = inlined_call_operand.vmem [shape: bf16[64,128], index: 1, kind: input, shape index: {}]   ;;  %s274_s0 = inlined_call_operand.vmem [shape: bf16[8,64], index: 0, kind: input, shape index: {}]   ;;  %s275_s3 = inlined_call_operand.vmem [shape: f32[1,8,1], index: 3, kind: output, shape index: {1}]   ;;  %s276_s2 = inlined_call_operand.vmem [shape: bf16[8,128], index: 2, kind: output, shape index: {0}]   ;;  %s277_s4 = inlined_call_operand.vmem [shape: f32[1,8,1], index: 4, kind: output, shape index: {2}]  }
   0x1   :  { %188 = vmatprep.subr.bf16.mxu0 %v206_v0  ;;  %v202_v1 = vld [vmem:[%s273_s1] sm:$0xff]   ;;  %196 = vmatprep.mubr.msk.bf16.mxu0 %vm207_vm0, %v206_v0  ;;  %v203_v2 = vld [vmem:[%s273_s1 + $0x8] sm:$0xff]   ;;  %v204_v3 = vld [vmem:[%s273_s1 + $0x10] sm:$0xff]   ;;  %48 = vst.msk [vmem:[%s275_s3] sm:$0xff] %vm47_vm2, %v206_v0 }
   0x2   :  { %189 = vmatpush3.bf16.msra.mxu0 %v202_v1  ;;  %v205_v4 = vld [vmem:[%s273_s1 + $0x18] sm:$0xff]   ;;  %v50_v5 = vld [vmem:[%s274_s0] sm:$0xf]  ;;  %49 = vst.msk [vmem:[%s277_s4] sm:$0xff] %vm47_vm2, %v206_v0 }
   0x3   :  { %190 = vmatprep.subr.bf16.mxu0 %v206_v0 }
   0x6   :  { %191 = vmatpush3.bf16.msra.mxu0 %v203_v2 }
   0x7   :  { %192 = vmatprep.subr.bf16.mxu0 %v206_v0 }
   0x8   :  { %v129_v12 = vld [vmem:[%s275_s3] sm:$0xff] }
   0x9   :  { %v135_v15 = vld [vmem:[%s277_s4] sm:$0xff] }
   0xa   :  { %193 = vmatpush3.bf16.msra.mxu0 %v204_v3 }
   0xb   :  { %194 = vmatprep.subr.bf16.mxu0 %v206_v0 }
   0xe   :  { %195 = vmatpush3.bf16.msra.mxu0 %v205_v4 }
  0x11   :  { %197 = vmatmul.mubr.msk.bf16.vlgmr.msra.gmra.mrb[0].mxu0 %vm83_vm1, %v50_v5 }
  0xe4   :  { %v121_v6 = vpop.f32.mrb[0].mxu0 }
  0xe5   :  { %v127_v7 = vpack.c.bf16 %v121_v6, %v121_v6  ;;  %130 = vadd.xlane.f32.xlu0 %v121_v6  ;;  %v198_v8 = vpop.f32.mrb[1].mxu0  ;;  %v136_v11 = vmul.f32 %v121_v6, %v121_v6 }
  0xe6   :  { %v124_v9 = vpop.f32.mrb[2].mxu0 }
  0xe7   :  { %128 = vst [vmem:[%s276_s2] sm:$0xf] %v127_v7  ;;  %v199_v10 = vpop.f32.mrb[3].mxu0 }
  0xe9   :  { %137 = vadd.xlane.f32.xlu0 %v136_v11 }
 0x172   :  { %v131_v13 = vpop.xlane.xlu0 %130 }
 0x173   :  { %v132_v14 = vadd.f32 %v131_v13, %v129_v12 }
 0x175   :  { %134 = vst.msk [vmem:[%s275_s3] sm:$0xff] %vm47_vm2, %v132_v14 }
 0x176   :  { %v138_v16 = vpop.xlane.xlu0 %137 }
 0x177   :  { %v139_v17 = vadd.f32 %v138_v16, %v135_v15 }
 0x179   :  { %140 = vst.msk [vmem:[%s277_s4] sm:$0xff] %vm47_vm2, %v139_v17 }

// kernel: discriminator_forward.7
= control target key start
LH: loop header
LB: loop body
LE: loop exit
PB: predicated region body
PF: predicated region fallthrough
CT: control target
= control target key end

     0   :  { %v1499_v0 = vmov 0   ;;  %s2346_s1 = inlined_call_operand.vmem [shape: f32[392,1], index: 1, kind: input, shape index: {}]   ;;  %s2347_s2 = inlined_call_operand.vmem [shape: f32[392,1], index: 2, kind: input, shape index: {}]   ;;  %s2348_s4 = inlined_call_operand.<no memory space> [shape: f32[1,1], index: 4, kind: input, shape index: {}]   ;;  %s2349_s3 = inlined_call_operand.vmem [shape: f32[392,1], index: 3, kind: input, shape index: {}]   ;;  %s2350_s0 = inlined_call_operand.vmem [shape: bf16[392,128], index: 0, kind: input, shape index: {}]   ;;  %s2351_s5 = inlined_call_operand.vmem [shape: f32[1,128], index: 5, kind: output, shape index: {}]  }
   0x1   :  { %1494 = vset.pattern.permute.xlu1 %v1499_v0  ;;  %1493 = vset.pattern.permute.xlu0 %v1499_v0  ;;  %v122_v1 = vld [vmem:[%s2346_s1 + $0x10] sm:$0xff]  ;;  %v120_v2 = vld [vmem:[%s2346_s1] sm:$0xff]  ;;  %v123_v3 = vld [vmem:[%s2346_s1 + $0x18] sm:$0xff] }
   0x2   :  { %181 = vperm.xlu1 %1494, %v122_v1   ;;  %171 = vperm.xlu0 %1493, %v120_v2   ;;  %v121_v4 = vld [vmem:[%s2346_s1 + $0x8] sm:$0xff]  ;;  %v124_v6 = vld [vmem:[%s2346_s1 + $0x20] sm:$0xff]  ;;  %v127_v7 = vld [vmem:[%s2346_s1 + $0x38] sm:$0xff] }
   0x3   :  { %v125_v5 = vld [vmem:[%s2346_s1 + $0x28] sm:$0xff]  ;;  %v126_v8 = vld [vmem:[%s2346_s1 + $0x30] sm:$0xff]  ;;  %v128_v10 = vld [vmem:[%s2346_s1 + $0x40] sm:$0xff] }
   0x4   :  { %v129_v9 = vld [vmem:[%s2346_s1 + $0x48] sm:$0xff]  ;;  %v131_v11 = vld [vmem:[%s2346_s1 + $0x58] sm:$0xff]  ;;  %v130_v12 = vld [vmem:[%s2346_s1 + $0x50] sm:$0xff] }
   0x5   :  { %v133_v13 = vld [vmem:[%s2346_s1 + $0x68] sm:$0xff]  ;;  %v132_v14 = vld [vmem:[%s2346_s1 + $0x60] sm:$0xff]  ;;  %v135_v15 = vld [vmem:[%s2346_s1 + $0x78] sm:$0xff] }
   0x6   :  { %186 = vperm.xlu1 %1494, %v123_v3   ;;  %176 = vperm.xlu0 %1493, %v121_v4   ;;  %v134_v16 = vld [vmem:[%s2346_s1 + $0x70] sm:$0xff]  ;;  %v137_v17 = vld [vmem:[%s2346_s1 + $0x88] sm:$0xff]  ;;  %v136_v18 = vld [vmem:[%s2346_s1 + $0x80] sm:$0xff] }
   0x7   :  { %v139_v19 = vld [vmem:[%s2346_s1 + $0x98] sm:$0xff]  ;;  %v138_v20 = vld [vmem:[%s2346_s1 + $0x90] sm:$0xff]  ;;  %v141_v21 = vld [vmem:[%s2346_s1 + $0xa8] sm:$0xff] }
   0x8   :  { %v140_v22 = vld [vmem:[%s2346_s1 + $0xa0] sm:$0xff]  ;;  %v143_v23 = vld [vmem:[%s2346_s1 + $0xb8] sm:$0xff]  ;;  %v142_v24 = vld [vmem:[%s2346_s1 + $0xb0] sm:$0xff] }
   0x9   :  { %v145_v25 = vld [vmem:[%s2346_s1 + $0xc8] sm:$0xff]  ;;  %v144_v26 = vld [vmem:[%s2346_s1 + $0xc0] sm:$0xff]  ;;  %v147_v27 = vld [vmem:[%s2346_s1 + $0xd8] sm:$0xff] }
   0xa   :  { %196 = vperm.xlu1 %1494, %v125_v5   ;;  %191 = vperm.xlu0 %1493, %v124_v6   ;;  %v146_v28 = vld [vmem:[%s2346_s1 + $0xd0] sm:$0xff]  ;;  %v149_v29 = vld [vmem:[%s2346_s1 + $0xe8] sm:$0xff]  ;;  %v148_v30 = vld [vmem:[%s2346_s1 + $0xe0] sm:$0xff] }
   0xb   :  { %v151_v31 = vld [vmem:[%s2346_s1 + $0xf8] sm:$0xff]  ;;  %v150_v32 = vld [vmem:[%s2346_s1 + $0xf0] sm:$0xff]  ;;  %v153_v33 = vld [vmem:[%s2346_s1 + $0x108] sm:$0xff] }
   0xc   :  { %v152_v34 = vld [vmem:[%s2346_s1 + $0x100] sm:$0xff]  ;;  %v155_v35 = vld [vmem:[%s2346_s1 + $0x118] sm:$0xff]  ;;  %v154_v36 = vld [vmem:[%s2346_s1 + $0x110] sm:$0xff] }
   0xd   :  { %v157_v37 = vld [vmem:[%s2346_s1 + $0x128] sm:$0xff]  ;;  %v156_v38 = vld [vmem:[%s2346_s1 + $0x120] sm:$0xff]  ;;  %v159_v39 = vld [vmem:[%s2346_s1 + $0x138] sm:$0xff] }
   0xe   :  { %206 = vperm.xlu1 %1494, %v127_v7   ;;  %201 = vperm.xlu0 %1493, %v126_v8   ;;  %v158_v40 = vld [vmem:[%s2346_s1 + $0x130] sm:$0xff]  ;;  %v161_v41 = vld [vmem:[%s2346_s1 + $0x148] sm:$0xff]  ;;  %v160_v42 = vld [vmem:[%s2346_s1 + $0x140] sm:$0xff] }
   0xf   :  { %v163_v43 = vld [vmem:[%s2346_s1 + $0x158] sm:$0xff]  ;;  %v162_v44 = vld [vmem:[%s2346_s1 + $0x150] sm:$0xff]  ;;  %v165_v45 = vld [vmem:[%s2346_s1 + $0x168] sm:$0xff] }
  0x10   :  { %v164_v46 = vld [vmem:[%s2346_s1 + $0x160] sm:$0xff]  ;;  %v167_v47 = vld [vmem:[%s2346_s1 + $0x178] sm:$0xff]  ;;  %v166_v48 = vld [vmem:[%s2346_s1 + $0x170] sm:$0xff] }
  0x11   :  { %v463_v49 = vld [vmem:[%s2347_s2] sm:$0xff]  ;;  %v465_v51 = vld [vmem:[%s2347_s2 + $0x10] sm:$0xff]  ;;  %v464_v52 = vld [vmem:[%s2347_s2 + $0x8] sm:$0xff] }
  0x12   :  { %216 = vperm.xlu1 %1494, %v129_v9   ;;  %211 = vperm.xlu0 %1493, %v128_v10   ;;  %v168_v50 = vld [vmem:[%s2346_s1 + $0x180] sm:$0xff]  ;;  %v466_v54 = vld [vmem:[%s2347_s2 + $0x18] sm:$0xff]  ;;  %v469_v55 = vld [vmem:[%s2347_s2 + $0x30] sm:$0xff] }
  0x13   :  { %v467_v53 = vld [vmem:[%s2347_s2 + $0x20] sm:$0xff]  ;;  %v468_v56 = vld [vmem:[%s2347_s2 + $0x28] sm:$0xff]  ;;  %v470_v58 = vld [vmem:[%s2347_s2 + $0x38] sm:$0xff] }
  0x14   :  { %v471_v57 = vld [vmem:[%s2347_s2 + $0x40] sm:$0xff]  ;;  %v473_v59 = vld [vmem:[%s2347_s2 + $0x50] sm:$0xff]  ;;  %v472_v60 = vld [vmem:[%s2347_s2 + $0x48] sm:$0xff] }
  0x15   :  { %v475_v61 = vld [vmem:[%s2347_s2 + $0x60] sm:$0xff]  ;;  %v474_v62 = vld [vmem:[%s2347_s2 + $0x58] sm:$0xff]  ;;  %v477_v63 = vld [vmem:[%s2347_s2 + $0x70] sm:$0xff] }
  0x16   :  { %226 = vperm.xlu1 %1494, %v131_v11   ;;  %221 = vperm.xlu0 %1493, %v130_v12   ;;  %v476_v0 = vld [vmem:[%s2347_s2 + $0x68] sm:$0xff]  ;;  %v479_v1 = vld [vmem:[%s2347_s2 + $0x80] sm:$0xff]  ;;  %v478_v2 = vld [vmem:[%s2347_s2 + $0x78] sm:$0xff] }
  0x17   :  { %v481_v5 = vld [vmem:[%s2347_s2 + $0x90] sm:$0xff]  ;;  %v480_v6 = vld [vmem:[%s2347_s2 + $0x88] sm:$0xff]  ;;  %v483_v9 = vld [vmem:[%s2347_s2 + $0xa0] sm:$0xff] }
  0x18   :  { %v482_v10 = vld [vmem:[%s2347_s2 + $0x98] sm:$0xff] }
  0x1a   :  { %236 = vperm.xlu1 %1494, %v133_v13   ;;  %231 = vperm.xlu0 %1493, %v132_v14   ;;  %v485_v13 = vld [vmem:[%s2347_s2 + $0xb0] sm:$0xff]  ;;  %v484_v14 = vld [vmem:[%s2347_s2 + $0xa8] sm:$0xff] }
  0x1e   :  { %246 = vperm.xlu1 %1494, %v135_v15   ;;  %241 = vperm.xlu0 %1493, %v134_v16  }
  0x22   :  { %256 = vperm.xlu1 %1494, %v137_v17   ;;  %251 = vperm.xlu0 %1493, %v136_v18   ;;  %v487_v17 = vld [vmem:[%s2347_s2 + $0xc0] sm:$0xff]  ;;  %v486_v18 = vld [vmem:[%s2347_s2 + $0xb8] sm:$0xff] }
  0x26   :  { %266 = vperm.xlu1 %1494, %v139_v19   ;;  %261 = vperm.xlu0 %1493, %v138_v20  }
  0x2a   :  { %276 = vperm.xlu1 %1494, %v141_v21   ;;  %271 = vperm.xlu0 %1493, %v140_v22   ;;  %v489_v21 = vld [vmem:[%s2347_s2 + $0xd0] sm:$0xff]  ;;  %v488_v22 = vld [vmem:[%s2347_s2 + $0xc8] sm:$0xff] }
  0x2e   :  { %286 = vperm.xlu1 %1494, %v143_v23   ;;  %281 = vperm.xlu0 %1493, %v142_v24  }
  0x32   :  { %296 = vperm.xlu1 %1494, %v145_v25   ;;  %291 = vperm.xlu0 %1493, %v144_v26   ;;  %v491_v25 = vld [vmem:[%s2347_s2 + $0xe0] sm:$0xff]  ;;  %v490_v26 = vld [vmem:[%s2347_s2 + $0xd8] sm:$0xff] }
  0x36   :  { %306 = vperm.xlu1 %1494, %v147_v27   ;;  %301 = vperm.xlu0 %1493, %v146_v28  }
  0x3a   :  { %316 = vperm.xlu1 %1494, %v149_v29   ;;  %311 = vperm.xlu0 %1493, %v148_v30   ;;  %v493_v29 = vld [vmem:[%s2347_s2 + $0xf0] sm:$0xff]  ;;  %v492_v30 = vld [vmem:[%s2347_s2 + $0xe8] sm:$0xff] }
  0x3e   :  { %326 = vperm.xlu1 %1494, %v151_v31   ;;  %321 = vperm.xlu0 %1493, %v150_v32  }
  0x42   :  { %336 = vperm.xlu1 %1494, %v153_v33   ;;  %331 = vperm.xlu0 %1493, %v152_v34   ;;  %v10_v33 = vstv %s2348_s4  ;;  %v495_v34 = vld [vmem:[%s2347_s2 + $0x100] sm:$0xff] }
  0x43   :  { %11 = vst [vmem:[#allocation2] sm:$0x1] %v10_v33 }
  0x46   :  { %346 = vperm.xlu1 %1494, %v155_v35   ;;  %341 = vperm.xlu0 %1493, %v154_v36   ;;  %v494_v35 = vld [vmem:[%s2347_s2 + $0xf8] sm:$0xff] }
  0x4a   :  { %356 = vperm.xlu1 %1494, %v157_v37   ;;  %351 = vperm.xlu0 %1493, %v156_v38   ;;  %v497_v38 = vld [vmem:[%s2347_s2 + $0x110] sm:$0xff] }
  0x4e   :  { %366 = vperm.xlu1 %1494, %v159_v39   ;;  %361 = vperm.xlu0 %1493, %v158_v40   ;;  %v496_v39 = vld [vmem:[%s2347_s2 + $0x108] sm:$0xff] }
  0x52   :  { %376 = vperm.xlu1 %1494, %v161_v41   ;;  %371 = vperm.xlu0 %1493, %v160_v42   ;;  %v499_v42 = vld [vmem:[%s2347_s2 + $0x120] sm:$0xff] }
  0x56   :  { %386 = vperm.xlu1 %1494, %v163_v43   ;;  %381 = vperm.xlu0 %1493, %v162_v44   ;;  %v498_v43 = vld [vmem:[%s2347_s2 + $0x118] sm:$0xff] }
  0x5a   :  { %396 = vperm.xlu1 %1494, %v165_v45   ;;  %391 = vperm.xlu0 %1493, %v164_v46   ;;  %v501_v46 = vld [vmem:[%s2347_s2 + $0x130] sm:$0xff] }
  0x5e   :  { %406 = vperm.xlu1 %1494, %v167_v47   ;;  %401 = vperm.xlu0 %1493, %v166_v48   ;;  %v500_v47 = vld [vmem:[%s2347_s2 + $0x128] sm:$0xff] }
  0x62   :  { %514 = vperm.xlu1 %1494, %v463_v49   ;;  %411 = vperm.xlu0 %1493, %v168_v50   ;;  %v503_v50 = vld [vmem:[%s2347_s2 + $0x140] sm:$0xff] }
  0x66   :  { %524 = vperm.xlu1 %1494, %v465_v51   ;;  %519 = vperm.xlu0 %1493, %v464_v52   ;;  %v502_v51 = vld [vmem:[%s2347_s2 + $0x138] sm:$0xff] }
  0x6a   :  { %534 = vperm.xlu1 %1494, %v467_v53   ;;  %529 = vperm.xlu0 %1493, %v466_v54   ;;  %v505_v54 = vld [vmem:[%s2347_s2 + $0x150] sm:$0xff] }
  0x6e   :  { %544 = vperm.xlu1 %1494, %v469_v55   ;;  %539 = vperm.xlu0 %1493, %v468_v56   ;;  %v504_v55 = vld [vmem:[%s2347_s2 + $0x148] sm:$0xff] }
  0x72   :  { %554 = vperm.xlu1 %1494, %v471_v57   ;;  %549 = vperm.xlu0 %1493, %v470_v58   ;;  %v507_v58 = vld [vmem:[%s2347_s2 + $0x160] sm:$0xff] }
  0x76   :  { %564 = vperm.xlu1 %1494, %v473_v59   ;;  %559 = vperm.xlu0 %1493, %v472_v60   ;;  %v506_v59 = vld [vmem:[%s2347_s2 + $0x158] sm:$0xff] }
  0x7a   :  { %574 = vperm.xlu1 %1494, %v475_v61   ;;  %569 = vperm.xlu0 %1493, %v474_v62   ;;  %v509_v62 = vld [vmem:[%s2347_s2 + $0x170] sm:$0xff] }
  0x7e   :  { %584 = vperm.xlu1 %1494, %v477_v63   ;;  %579 = vperm.xlu0 %1493, %v476_v0   ;;  %v508_v63 = vld [vmem:[%s2347_s2 + $0x168] sm:$0xff] }
  0x81   :  { %v1728_v3 = vpop.permute.xlu1 %181  ;;  %v1730_v4 = vpop.permute.xlu0 %171 }
  0x82   :  { %594 = vperm.xlu1 %1494, %v479_v1   ;;  %589 = vperm.xlu0 %1493, %v478_v2   ;;  %v511_v2 = vld [vmem:[%s2347_s2 + $0x180] sm:$0xff] }
  0x85   :  { %v1738_v7 = vpop.permute.xlu1 %186  ;;  %v1740_v8 = vpop.permute.xlu0 %176 }
  0x86   :  { %604 = vperm.xlu1 %1494, %v481_v5   ;;  %599 = vperm.xlu0 %1493, %v480_v6   ;;  %v510_v5 = vld [vmem:[%s2347_s2 + $0x178] sm:$0xff] }
  0x89   :  { %v1748_v11 = vpop.permute.xlu1 %196  ;;  %v1750_v12 = vpop.permute.xlu0 %191 }
  0x8a   :  { %614 = vperm.xlu1 %1494, %v483_v9   ;;  %609 = vperm.xlu0 %1493, %v482_v10   ;;  %v954_v10 = vld [vmem:[%s2349_s3 + $0x8] sm:$0xff] }
  0x8d   :  { %v1758_v15 = vpop.permute.xlu1 %206  ;;  %v1760_v16 = vpop.permute.xlu0 %201 }
  0x8e   :  { %624 = vperm.xlu1 %1494, %v485_v13   ;;  %619 = vperm.xlu0 %1493, %v484_v14   ;;  %v953_v13 = vld [vmem:[%s2349_s3] sm:$0xff] }
  0x91   :  { %v1768_v19 = vpop.permute.xlu1 %216  ;;  %v1770_v20 = vpop.permute.xlu0 %211 }
  0x92   :  { %634 = vperm.xlu1 %1494, %v487_v17   ;;  %629 = vperm.xlu0 %1493, %v486_v18   ;;  %v956_v18 = vld [vmem:[%s2349_s3 + $0x18] sm:$0xff] }
  0x95   :  { %v1778_v23 = vpop.permute.xlu1 %226  ;;  %v1780_v24 = vpop.permute.xlu0 %221 }
  0x96   :  { %644 = vperm.xlu1 %1494, %v489_v21   ;;  %639 = vperm.xlu0 %1493, %v488_v22   ;;  %v955_v21 = vld [vmem:[%s2349_s3 + $0x10] sm:$0xff] }
  0x99   :  { %v1788_v27 = vpop.permute.xlu1 %236  ;;  %v1790_v28 = vpop.permute.xlu0 %231 }
  0x9a   :  { %654 = vperm.xlu1 %1494, %v491_v25   ;;  %649 = vperm.xlu0 %1493, %v490_v26   ;;  %v958_v26 = vld [vmem:[%s2349_s3 + $0x28] sm:$0xff] }
  0x9d   :  { %v1798_v31 = vpop.permute.xlu1 %246  ;;  %v1800_v32 = vpop.permute.xlu0 %241 }
  0x9e   :  { %664 = vperm.xlu1 %1494, %v493_v29   ;;  %659 = vperm.xlu0 %1493, %v492_v30   ;;  %v957_v29 = vld [vmem:[%s2349_s3 + $0x20] sm:$0xff] }
  0xa1   :  { %v1811_v36 = vpop.permute.xlu1 %256  ;;  %v1813_v37 = vpop.permute.xlu0 %251 }
  0xa2   :  { %674 = vperm.xlu1 %1494, %v495_v34   ;;  %669 = vperm.xlu0 %1493, %v494_v35   ;;  %v960_v34 = vld [vmem:[%s2349_s3 + $0x38] sm:$0xff]  ;;  %v959_v35 = vld [vmem:[%s2349_s3 + $0x30] sm:$0xff] }
  0xa5   :  { %v1821_v40 = vpop.permute.xlu1 %266  ;;  %v1823_v41 = vpop.permute.xlu0 %261 }
  0xa6   :  { %684 = vperm.xlu1 %1494, %v497_v38   ;;  %679 = vperm.xlu0 %1493, %v496_v39  }
  0xa9   :  { %v1831_v44 = vpop.permute.xlu1 %276  ;;  %v1833_v45 = vpop.permute.xlu0 %271 }
  0xaa   :  { %694 = vperm.xlu1 %1494, %v499_v42   ;;  %689 = vperm.xlu0 %1493, %v498_v43   ;;  %v962_v42 = vld [vmem:[%s2349_s3 + $0x48] sm:$0xff]  ;;  %v961_v43 = vld [vmem:[%s2349_s3 + $0x40] sm:$0xff] }
  0xad   :  { %v1841_v48 = vpop.permute.xlu1 %286  ;;  %v1843_v49 = vpop.permute.xlu0 %281 }
  0xae   :  { %704 = vperm.xlu1 %1494, %v501_v46   ;;  %699 = vperm.xlu0 %1493, %v500_v47  }
  0xb1   :  { %v1851_v52 = vpop.permute.xlu1 %296  ;;  %v1853_v53 = vpop.permute.xlu0 %291 }
  0xb2   :  { %2352 = vst [vmem:[#allocation3_spill] sm:$0xff] %v1851_v52  ;;  %714 = vperm.xlu1 %1494, %v503_v50   ;;  %709 = vperm.xlu0 %1493, %v502_v51   ;;  %v964_v50 = vld [vmem:[%s2349_s3 + $0x58] sm:$0xff]  ;;  %v963_v51 = vld [vmem:[%s2349_s3 + $0x50] sm:$0xff] }
  0xb5   :  { %v1861_v56 = vpop.permute.xlu1 %306  ;;  %v1863_v57 = vpop.permute.xlu0 %301 }
  0xb6   :  { %2353 = vst [vmem:[#allocation4_spill] sm:$0xff] %v1861_v56  ;;  %2354 = vst [vmem:[#allocation5_spill] sm:$0xff] %v1863_v57  ;;  %724 = vperm.xlu1 %1494, %v505_v54   ;;  %719 = vperm.xlu0 %1493, %v504_v55  }
  0xb9   :  { %v1871_v60 = vpop.permute.xlu1 %316  ;;  %v1873_v61 = vpop.permute.xlu0 %311 }
  0xba   :  { %2355 = vst [vmem:[#allocation6_spill] sm:$0xff] %v1871_v60  ;;  %2356 = vst [vmem:[#allocation7_spill] sm:$0xff] %v1873_v61  ;;  %734 = vperm.xlu1 %1494, %v507_v58   ;;  %729 = vperm.xlu0 %1493, %v506_v59   ;;  %v966_v58 = vld [vmem:[%s2349_s3 + $0x68] sm:$0xff]  ;;  %v965_v59 = vld [vmem:[%s2349_s3 + $0x60] sm:$0xff] }
  0xbb   :  { %v1350_v61 = vld [vmem:[#allocation2] sm:$0x1] }
  0xbd   :  { %v1881_v0 = vpop.permute.xlu1 %326  ;;  %v1883_v1 = vpop.permute.xlu0 %321 }
  0xbe   :  { %2357 = vst [vmem:[#allocation8_spill] sm:$0xff] %v1881_v0  ;;  %2358 = vst [vmem:[#allocation9_spill] sm:$0xff] %v1883_v1  ;;  %744 = vperm.xlu1 %1494, %v509_v62   ;;  %739 = vperm.xlu0 %1493, %v508_v63   ;;  %v998_v1 = vld [vmem:[%s2349_s3 + $0x168] sm:$0xff] }
  0xc1   :  { %v1891_v6 = vpop.permute.xlu1 %336  ;;  %v1893_v9 = vpop.permute.xlu0 %331 }
  0xc2   :  { %2359 = vst [vmem:[#allocation10_spill] sm:$0xff] %v1891_v6  ;;  %2360 = vst [vmem:[#allocation11_spill] sm:$0xff] %v1893_v9  ;;  %754 = vperm.xlu1 %1494, %v511_v2   ;;  %749 = vperm.xlu0 %1493, %v510_v5   ;;  %v968_v2 = vld [vmem:[%s2349_s3 + $0x78] sm:$0xff]  ;;  %v967_v5 = vld [vmem:[%s2349_s3 + $0x70] sm:$0xff] }
  0xc3   :  { %v996_v9 = vld [vmem:[%s2349_s3 + $0x158] sm:$0xff] }
  0xc5   :  { %v1901_v14 = vpop.permute.xlu1 %346  ;;  %v1903_v17 = vpop.permute.xlu0 %341 }
  0xc6   :  { %2361 = vst [vmem:[#allocation12_spill] sm:$0xff] %v1901_v14  ;;  %2362 = vst [vmem:[#allocation13_spill] sm:$0xff] %v1903_v17  ;;  %1009 = vperm.xlu1 %1494, %v954_v10   ;;  %1004 = vperm.xlu0 %1493, %v953_v13   ;;  %v994_v17 = vld [vmem:[%s2349_s3 + $0x148] sm:$0xff] }
  0xc9   :  { %v1911_v22 = vpop.permute.xlu1 %356  ;;  %v1913_v25 = vpop.permute.xlu0 %351 }
  0xca   :  { %2363 = vst [vmem:[#allocation14_spill] sm:$0xff] %v1911_v22  ;;  %2364 = vst [vmem:[#allocation15_spill] sm:$0xff] %v1913_v25  ;;  %1019 = vperm.xlu1 %1494, %v956_v18   ;;  %1014 = vperm.xlu0 %1493, %v955_v21   ;;  %v970_v18 = vld [vmem:[%s2349_s3 + $0x88] sm:$0xff]  ;;  %v969_v21 = vld [vmem:[%s2349_s3 + $0x80] sm:$0xff] }
  0xcb   :  { %v992_v25 = vld [vmem:[%s2349_s3 + $0x138] sm:$0xff] }
  0xcd   :  { %v1921_v30 = vpop.permute.xlu1 %366  ;;  %v1923_v33 = vpop.permute.xlu0 %361 }
  0xce   :  { %2365 = vst [vmem:[#allocation16_spill] sm:$0xff] %v1921_v30  ;;  %2366 = vst [vmem:[#allocation17_spill] sm:$0xff] %v1923_v33  ;;  %1029 = vperm.xlu1 %1494, %v958_v26   ;;  %1024 = vperm.xlu0 %1493, %v957_v29   ;;  %v990_v33 = vld [vmem:[%s2349_s3 + $0x128] sm:$0xff] }
  0xd1   :  { %v1931_v38 = vpop.permute.xlu1 %376  ;;  %v1933_v39 = vpop.permute.xlu0 %371 }
  0xd2   :  { %2367 = vst [vmem:[#allocation18_spill] sm:$0xff] %v1931_v38  ;;  %2368 = vst [vmem:[#allocation19_spill] sm:$0xff] %v1933_v39  ;;  %1039 = vperm.xlu1 %1494, %v960_v34   ;;  %1034 = vperm.xlu0 %1493, %v959_v35   ;;  %v972_v34 = vld [vmem:[%s2349_s3 + $0x98] sm:$0xff]  ;;  %v971_v35 = vld [vmem:[%s2349_s3 + $0x90] sm:$0xff] }
  0xd3   :  { %v988_v39 = vld [vmem:[%s2349_s3 + $0x118] sm:$0xff] }
  0xd5   :  { %v1941_v46 = vpop.permute.xlu1 %386  ;;  %v1943_v47 = vpop.permute.xlu0 %381 }
  0xd6   :  { %2369 = vst [vmem:[#allocation20_spill] sm:$0xff] %v1941_v46  ;;  %2370 = vst [vmem:[#allocation21_spill] sm:$0xff] %v1943_v47  ;;  %1049 = vperm.xlu1 %1494, %v962_v42   ;;  %1044 = vperm.xlu0 %1493, %v961_v43   ;;  %v986_v47 = vld [vmem:[%s2349_s3 + $0x108] sm:$0xff] }
  0xd9   :  { %v1951_v54 = vpop.permute.xlu1 %396  ;;  %v1953_v55 = vpop.permute.xlu0 %391 }
  0xda   :  { %2371 = vst [vmem:[#allocation22_spill] sm:$0xff] %v1951_v54  ;;  %2372 = vst [vmem:[#allocation23_spill] sm:$0xff] %v1953_v55  ;;  %1059 = vperm.xlu1 %1494, %v964_v50   ;;  %1054 = vperm.xlu0 %1493, %v963_v51   ;;  %v974_v50 = vld [vmem:[%s2349_s3 + $0xa8] sm:$0xff]  ;;  %v973_v51 = vld [vmem:[%s2349_s3 + $0xa0] sm:$0xff] }
  0xdb   :  { %v984_v55 = vld [vmem:[%s2349_s3 + $0xf8] sm:$0xff] }
  0xdd   :  { %v1961_v62 = vpop.permute.xlu1 %406  ;;  %v1963_v63 = vpop.permute.xlu0 %401 }
  0xde   :  { %2373 = vst [vmem:[#allocation24_spill] sm:$0xff] %v1961_v62  ;;  %2374 = vst [vmem:[#allocation25_spill] sm:$0xff] %v1963_v63  ;;  %1069 = vperm.xlu1 %1494, %v966_v58   ;;  %1064 = vperm.xlu0 %1493, %v965_v59   ;;  %v982_v63 = vld [vmem:[%s2349_s3 + $0xe8] sm:$0xff] }
  0xe1   :  { %v1971_v10 = vpop.permute.xlu1 %514  ;;  %v1973_v13 = vpop.permute.xlu0 %411 }
  0xe2   :  { %2375 = vst [vmem:[#allocation26_spill] sm:$0xff] %v1973_v13  ;;  %1079 = vperm.xlu1 %1494, %v968_v2   ;;  %1074 = vperm.xlu0 %1493, %v967_v5   ;;  %v976_v2 = vld [vmem:[%s2349_s3 + $0xb8] sm:$0xff]  ;;  %v975_v5 = vld [vmem:[%s2349_s3 + $0xb0] sm:$0xff] }
  0xe3   :  { %v980_v13 = vld [vmem:[%s2349_s3 + $0xd8] sm:$0xff] }
  0xe5   :  { %v1981_v26 = vpop.permute.xlu1 %524  ;;  %v1983_v29 = vpop.permute.xlu0 %519 }
  0xe6   :  { %1089 = vperm.xlu1 %1494, %v970_v18   ;;  %1084 = vperm.xlu0 %1493, %v969_v21  }
  0xe9   :  { %v1991_v42 = vpop.permute.xlu1 %534  ;;  %v1993_v43 = vpop.permute.xlu0 %529 }
  0xea   :  { %1099 = vperm.xlu1 %1494, %v972_v34   ;;  %1094 = vperm.xlu0 %1493, %v971_v35   ;;  %v978_v34 = vld [vmem:[%s2349_s3 + $0xc8] sm:$0xff]  ;;  %v977_v35 = vld [vmem:[%s2349_s3 + $0xc0] sm:$0xff] }
  0xed   :  { %v2001_v58 = vpop.permute.xlu1 %544  ;;  %v2003_v59 = vpop.permute.xlu0 %539 }
  0xee   :  { %1109 = vperm.xlu1 %1494, %v974_v50   ;;  %1104 = vperm.xlu0 %1493, %v973_v51  }
  0xf1   :  { %v2011_v18 = vpop.permute.xlu1 %554  ;;  %v2013_v21 = vpop.permute.xlu0 %549 }
  0xf2   :  { %1119 = vperm.xlu1 %1494, %v976_v2   ;;  %1114 = vperm.xlu0 %1493, %v975_v5   ;;  %v979_v2 = vld [vmem:[%s2349_s3 + $0xd0] sm:$0xff] }
  0xf5   :  { %v2021_v50 = vpop.permute.xlu1 %564  ;;  %v2023_v51 = vpop.permute.xlu0 %559 }
  0xf6   :  { %1129 = vperm.xlu1 %1494, %v978_v34   ;;  %1124 = vperm.xlu0 %1493, %v977_v35   ;;  %v981_v34 = vld [vmem:[%s2349_s3 + $0xe0] sm:$0xff] }
  0xf9   :  { %v2031_v5 = vpop.permute.xlu1 %574  ;;  %v2033_v62 = vpop.permute.xlu0 %569 }
  0xfa   :  { %1139 = vperm.xlu1 %1494, %v980_v13   ;;  %1134 = vperm.xlu0 %1493, %v979_v2   ;;  %v983_v13 = vld [vmem:[%s2349_s3 + $0xf0] sm:$0xff] }
  0xfd   :  { %v2041_v35 = vpop.permute.xlu1 %584  ;;  %v2043_v54 = vpop.permute.xlu0 %579 }
  0xfe   :  { %1149 = vperm.xlu1 %1494, %v982_v63   ;;  %1144 = vperm.xlu0 %1493, %v981_v34   ;;  %v985_v63 = vld [vmem:[%s2349_s3 + $0x100] sm:$0xff] }
 0x101   :  { %v2051_v2 = vpop.permute.xlu1 %594  ;;  %v2053_v46 = vpop.permute.xlu0 %589 }
 0x102   :  { %1159 = vperm.xlu1 %1494, %v984_v55   ;;  %1154 = vperm.xlu0 %1493, %v983_v13   ;;  %v987_v55 = vld [vmem:[%s2349_s3 + $0x110] sm:$0xff] }
 0x105   :  { %v2061_v34 = vpop.permute.xlu1 %604  ;;  %v2063_v38 = vpop.permute.xlu0 %599 }
 0x106   :  { %1169 = vperm.xlu1 %1494, %v986_v47   ;;  %1164 = vperm.xlu0 %1493, %v985_v63   ;;  %v989_v47 = vld [vmem:[%s2349_s3 + $0x120] sm:$0xff] }
 0x109   :  { %v2071_v13 = vpop.permute.xlu1 %614  ;;  %v2073_v30 = vpop.permute.xlu0 %609 }
 0x10a   :  { %1179 = vperm.xlu1 %1494, %v988_v39   ;;  %1174 = vperm.xlu0 %1493, %v987_v55   ;;  %v991_v39 = vld [vmem:[%s2349_s3 + $0x130] sm:$0xff] }
 0x10d   :  { %v2081_v63 = vpop.permute.xlu1 %624  ;;  %v2083_v22 = vpop.permute.xlu0 %619 }
 0x10e   :  { %1189 = vperm.xlu1 %1494, %v990_v33   ;;  %1184 = vperm.xlu0 %1493, %v989_v47   ;;  %v993_v33 = vld [vmem:[%s2349_s3 + $0x140] sm:$0xff] }
 0x111   :  { %v2091_v55 = vpop.permute.xlu1 %634  ;;  %v2093_v14 = vpop.permute.xlu0 %629 }
 0x112   :  { %2376 = vst [vmem:[#allocation27_spill] sm:$0xff] %v2091_v55  ;;  %2377 = vst [vmem:[#allocation28_spill] sm:$0xff] %v2093_v14  ;;  %1199 = vperm.xlu1 %1494, %v992_v25   ;;  %1194 = vperm.xlu0 %1493, %v991_v39   ;;  %v995_v25 = vld [vmem:[%s2349_s3 + $0x150] sm:$0xff] }
 0x115   :  { %v2101_v47 = vpop.permute.xlu1 %644  ;;  %v2103_v6 = vpop.permute.xlu0 %639 }
 0x116   :  { %2378 = vst [vmem:[#allocation29_spill] sm:$0xff] %v2101_v47  ;;  %2379 = vst [vmem:[#allocation30_spill] sm:$0xff] %v2103_v6  ;;  %1209 = vperm.xlu1 %1494, %v994_v17   ;;  %1204 = vperm.xlu0 %1493, %v993_v33   ;;  %v997_v17 = vld [vmem:[%s2349_s3 + $0x160] sm:$0xff] }
 0x119   :  { %v2111_v39 = vpop.permute.xlu1 %654  ;;  %v2113_v0 = vpop.permute.xlu0 %649 }
 0x11a   :  { %2380 = vst [vmem:[#allocation31_spill] sm:$0xff] %v2111_v39  ;;  %2381 = vst [vmem:[#allocation32_spill] sm:$0xff] %v2113_v0  ;;  %1219 = vperm.xlu1 %1494, %v996_v9   ;;  %1214 = vperm.xlu0 %1493, %v995_v25   ;;  %v1000_v39 = vld [vmem:[%s2349_s3 + $0x178] sm:$0xff]  ;;  %v999_v9 = vld [vmem:[%s2349_s3 + $0x170] sm:$0xff] }
 0x11d   :  { %v2121_v33 = vpop.permute.xlu1 %664  ;;  %v2123_v60 = vpop.permute.xlu0 %659 }
 0x11e   :  { %2382 = vst [vmem:[#allocation33_spill] sm:$0xff] %v2121_v33  ;;  %2383 = vst [vmem:[#allocation34_spill] sm:$0xff] %v2123_v60  ;;  %1229 = vperm.xlu1 %1494, %v998_v1   ;;  %1224 = vperm.xlu0 %1493, %v997_v17   ;;  %v1001_v1 = vld [vmem:[%s2349_s3 + $0x180] sm:$0xff] }
 0x121   :  { %v2131_v25 = vpop.permute.xlu1 %674  ;;  %v2133_v0 = vpop.permute.xlu0 %669 }
 0x122   :  { %2384 = vst [vmem:[#allocation35_spill] sm:$0xff] %v2131_v25  ;;  %2385 = vst [vmem:[#allocation36_spill] sm:$0xff] %v2133_v0  ;;  %1239 = vperm.xlu1 %1494, %v1000_v39   ;;  %1234 = vperm.xlu0 %1493, %v999_v9  }
 0x125   :  { %v2138_v17 = vpop.permute.xlu1 %684  ;;  %v2140_v33 = vpop.permute.xlu0 %679 }
 0x126   :  { %2386 = vst [vmem:[#allocation37_spill] sm:$0xff] %v2138_v17  ;;  %2387 = vst [vmem:[#allocation38_spill] sm:$0xff] %v2140_v33  ;;  %1353 = vperm.xlu1 %1494, %v1350_v61   ;;  %1244 = vperm.xlu0 %1493, %v1001_v1   ;;  %v1374_v17 = vld [vmem:[%s2350_s0] sm:$0xff]  }
 0x127   :  { %v1375_v1 = vunpack.c.l.bf16 %v1374_v17 }
 0x129   :  { %v2142_v60 = vpop.permute.xlu1 %694  ;;  %v2144_v47 = vpop.permute.xlu0 %689 }
 0x12a   :  { %2388 = vst [vmem:[#allocation39_spill] sm:$0xff] %v2142_v60  ;;  %2389 = vst [vmem:[#allocation40_spill] sm:$0xff] %v2144_v47  ;;  %v1376_v60 = vunpack.c.h.bf16 %v1374_v17 }
 0x12c   :  { %v415_v33 = vmul.f32 %v1376_v60, %v1740_v8 }
 0x12d   :  { %v2146_v25 = vpop.permute.xlu1 %704  ;;  %v2148_v0 = vpop.permute.xlu0 %699 }
 0x12e   :  { %2390 = vst [vmem:[#allocation41_spill] sm:$0xff] %v2146_v25  ;;  %2391 = vst [vmem:[#allocation42_spill] sm:$0xff] %v2148_v0  ;;  %v1469_v25 = vld [vmem:[%s2350_s0 + $0x8] sm:$0xff]   ;;  %v758_v6 = vadd.f32 %v1983_v29, %v415_v33 }
 0x130   :  { %vm807_vm0 = vcmp.gt.f32.partialorder %v758_v6, 0.0 }
 0x131   :  { %v2150_v39 = vpop.permute.xlu1 %714  ;;  %v2152_v9 = vpop.permute.xlu0 %709 }
 0x132   :  { %2392 = vst [vmem:[#allocation43_spill] sm:$0xff] %v2150_v39  ;;  %2393 = vst [vmem:[#allocation44_spill] sm:$0xff] %v2152_v9  ;;  %v1379_v39 = vunpack.c.l.bf16 %v1469_v25  ;;  %v414_v9 = vmul.f32 %v1375_v1, %v1730_v4  ;;  %v1471_v4 = vld [vmem:[%s2350_s0 + $0x18] sm:$0xff]  }
 0x133   :  { %v1388_v1 = vunpack.c.h.bf16 %v1471_v4 }
 0x134   :  { %v757_v17 = vadd.f32 %v1971_v10, %v414_v9 }
 0x135   :  { %v2157_v56 = vpop.permute.xlu1 %724  ;;  %v2159_v61 = vpop.permute.xlu0 %719 }
 0x136   :  { %2394 = vst [vmem:[#allocation45_spill] sm:$0xff] %v2157_v56  ;;  %2395 = vst [vmem:[#allocation46_spill] sm:$0xff] %v2159_v61  ;;  %v1470_v56 = vld [vmem:[%s2350_s0 + $0x10] sm:$0xff]   ;;  %v1380_v61 = vunpack.c.h.bf16 %v1469_v25  ;;  %v856_v25 = vmul.f32 0.2, %v758_v6  ;;  %vm806_vm1 = vcmp.gt.f32.partialorder %v757_v17, 0.0 }
 0x137   :  { %v1384_v52 = vunpack.c.h.bf16 %v1470_v56  ;;  %v855_v33 = vmul.f32 0.2, %v757_v17 }
 0x138   :  { %v417_v8 = vmul.f32 %v1380_v61, %v1738_v7  ;;  %v1472_v7 = vld [vmem:[%s2350_s0 + $0x20] sm:$0xff]  }
 0x139   :  { %v2164_v47 = vpop.permute.xlu1 %734  ;;  %v2166_v0 = vpop.permute.xlu0 %729  ;;  %v419_v9 = vmul.f32 %v1384_v52, %v1748_v11  ;;  %v1473_v11 = vld [vmem:[%s2350_s0 + $0x28] sm:$0xff]  }
 0x13a   :  { %2396 = vst [vmem:[#allocation47_spill] sm:$0xff] %v2164_v47  ;;  %2397 = vst [vmem:[#allocation48_spill] sm:$0xff] %v2166_v0  ;;  %v416_v47 = vmul.f32 %v1379_v39, %v1728_v3  ;;  %v1383_v0 = vunpack.c.l.bf16 %v1470_v56  ;;  %v1387_v39 = vunpack.c.l.bf16 %v1471_v4  ;;  %v760_v56 = vadd.f32 %v1993_v43, %v417_v8 }
 0x13b   :  { %v762_v43 = vadd.f32 %v2003_v59, %v419_v9  ;;  %v1392_v4 = vunpack.c.h.bf16 %v1472_v7  ;;  %v1474_v59 = vld [vmem:[%s2350_s0 + $0x30] sm:$0xff]   ;;  %v1396_v9 = vunpack.c.h.bf16 %v1473_v11 }
 0x13c   :  { %v759_v60 = vadd.f32 %v1981_v26, %v416_v47  ;;  %v418_v3 = vmul.f32 %v1383_v0, %v1750_v12  ;;  %v420_v12 = vmul.f32 %v1387_v39, %v1760_v16  ;;  %v1391_v0 = vunpack.c.l.bf16 %v1472_v7 }
 0x13d   :  { %v2175_v57 = vpop.permute.xlu1 %744  ;;  %v2177_v55 = vpop.permute.xlu0 %739  ;;  %v858_v52 = vmul.f32 0.2, %v760_v56  ;;  %vm809_vm3 = vcmp.gt.f32.partialorder %v760_v56, 0.0  ;;  %vm811_vm5 = vcmp.gt.f32.partialorder %v762_v43, 0.0 }
 0x13e   :  { %2398 = vst [vmem:[#allocation49_spill] sm:$0xff] %v2175_v57  ;;  %2399 = vst [vmem:[#allocation50_spill] sm:$0xff] %v2177_v55  ;;  %v857_v26 = vmul.f32 0.2, %v759_v60  ;;  %v761_v47 = vadd.f32 %v1991_v42, %v418_v3  ;;  %v904_v57 = vsel %vm806_vm1, %v757_v17, %v855_v33  ;;  %vm808_vm2 = vcmp.gt.f32.partialorder %v759_v60, 0.0 }
 0x13f   :  { %v421_v42 = vmul.f32 %v1388_v1, %v1758_v15  ;;  %v763_v17 = vadd.f32 %v2001_v58, %v420_v12  ;;  %v422_v33 = vmul.f32 %v1391_v0, %v1770_v20  ;;  %v860_v3 = vmul.f32 0.2, %v762_v43 }
 0x140   :  { %vm810_vm4 = vcmp.gt.f32.partialorder %v761_v47, 0.0  ;;  %v907_v15 = vsel %vm809_vm3, %v760_v56, %v858_v52  ;;  %v1400_v52 = vunpack.c.h.bf16 %v1474_v59 }
 0x141   :  { %v2185_v10 = vpop.permute.xlu1 %754  ;;  %v2187_v29 = vpop.permute.xlu0 %749  ;;  %v764_v39 = vadd.f32 %v2013_v21, %v421_v42  ;;  %v861_v7 = vmul.f32 0.2, %v763_v17  ;;  %vm812_vm6 = vcmp.gt.f32.partialorder %v763_v17, 0.0  ;;  %v1475_v21 = vld [vmem:[%s2350_s0 + $0x38] sm:$0xff]  }
 0x142   :  { %2400 = vst [vmem:[#allocation51_spill] sm:$0xff] %v2185_v10  ;;  %2401 = vst [vmem:[#allocation52_spill] sm:$0xff] %v2187_v29  ;;  %v905_v10 = vsel %vm807_vm0, %v758_v6, %v856_v25  ;;  %v859_v6 = vmul.f32 0.2, %v761_v47  ;;  %v906_v25 = vsel %vm808_vm2, %v759_v60, %v857_v26  ;;  %v423_v60 = vmul.f32 %v1392_v4, %v1768_v19 }
 0x143   :  { %v862_v56 = vmul.f32 0.2, %v764_v39  ;;  %v909_v19 = vsel %vm811_vm5, %v762_v43, %v860_v3  ;;  %vm813_vm7 = vcmp.gt.f32.partialorder %v764_v39, 0.0  ;;  %v1404_v3 = vunpack.c.h.bf16 %v1475_v21 }
 0x144   :  { %v908_v20 = vsel %vm810_vm4, %v761_v47, %v859_v6  ;;  %v425_v47 = vmul.f32 %v1396_v9, %v1778_v23 }
 0x145   :  { %v1010_v61 = vpop.permute.xlu1 %1009  ;;  %v1005_v29 = vpop.permute.xlu0 %1004  ;;  %v911_v23 = vsel %vm813_vm7, %v764_v39, %v862_v56 }
 0x146   :  { %v1248_v55 = vmul.f32 %v1010_v61, %v905_v10  ;;  %v1247_v14 = vmul.f32 %v1005_v29, %v904_v57  ;;  %v1395_v10 = vunpack.c.l.bf16 %v1473_v11  ;;  %v1399_v61 = vunpack.c.l.bf16 %v1474_v59 }
 0x147   :  { %v766_v11 = vadd.f32 %v2023_v51, %v423_v60  ;;  %v1476_v51 = vld [vmem:[%s2350_s0 + $0x40] sm:$0xff]   ;;  %v768_v59 = vadd.f32 %v2033_v62, %v425_v47  ;;  %v1477_v62 = vld [vmem:[%s2350_s0 + $0x48] sm:$0xff]  }
 0x148   :  { %v1296_v16 = vadd.f32 %v1248_v55, %v1247_v14  ;;  %v765_v14 = vadd.f32 %v2011_v18, %v422_v33  ;;  %v426_v33 = vmul.f32 %v1399_v61, %v1790_v28 }
 0x149   :  { %v1020_v8 = vpop.permute.xlu1 %1019  ;;  %v1015_v57 = vpop.permute.xlu0 %1014  ;;  %v864_v43 = vmul.f32 0.2, %v766_v11  ;;  %vm815_vm9 = vcmp.gt.f32.partialorder %v766_v11, 0.0  ;;  %v866_v39 = vmul.f32 0.2, %v768_v59  ;;  %vm817_vm11 = vcmp.gt.f32.partialorder %v768_v59, 0.0 }
 0x14a   :  { %v1249_v29 = vmul.f32 %v1015_v57, %v906_v25  ;;  %v1250_v1 = vmul.f32 %v1020_v8, %v907_v15  ;;  %v424_v57 = vmul.f32 %v1395_v10, %v1780_v24  ;;  %v863_v42 = vmul.f32 0.2, %v765_v14 }
 0x14b   :  { %v910_v24 = vsel %vm812_vm6, %v763_v17, %v861_v7  ;;  %v1403_v10 = vunpack.c.l.bf16 %v1475_v21  ;;  %vm814_vm8 = vcmp.gt.f32.partialorder %v765_v14, 0.0  ;;  %v427_v17 = vmul.f32 %v1400_v52, %v1788_v27 }
 0x14c   :  { %v1297_v58 = vadd.f32 %v1296_v16, %v1249_v29  ;;  %v767_v6 = vadd.f32 %v2021_v50, %v424_v57  ;;  %v912_v28 = vsel %vm814_vm8, %v765_v14, %v863_v42  ;;  %v1407_v7 = vunpack.c.l.bf16 %v1476_v51 }
 0x14d   :  { %v1030_v55 = vpop.permute.xlu1 %1029  ;;  %v1025_v26 = vpop.permute.xlu0 %1024  ;;  %v770_v61 = vadd.f32 %v2043_v54, %v427_v17  ;;  %v913_v27 = vsel %vm815_vm9, %v766_v11, %v864_v43  ;;  %v429_v14 = vmul.f32 %v1404_v3, %v1798_v31  ;;  %v1411_v52 = vunpack.c.l.bf16 %v1477_v62  ;;  %v1478_v54 = vld [vmem:[%s2350_s0 + $0x50] sm:$0xff]  }
 0x14e   :  { %v1251_v12 = vmul.f32 %v1025_v26, %v908_v20  ;;  %v1298_v0 = vadd.f32 %v1297_v58, %v1250_v1  ;;  %v1252_v4 = vmul.f32 %v1030_v55, %v909_v19  ;;  %v865_v9 = vmul.f32 0.2, %v767_v6 }
 0x14f   :  { %v769_v1 = vadd.f32 %v2031_v5, %v426_v33  ;;  %vm816_vm10 = vcmp.gt.f32.partialorder %v767_v6, 0.0  ;;  %v428_v20 = vmul.f32 %v1403_v10, %v1800_v32  ;;  %v430_v47 = vmul.f32 %v1407_v7, %v1813_v37 }
 0x150   :  { %v1299_v18 = vadd.f32 %v1298_v0, %v1251_v12  ;;  %v1408_v12 = vunpack.c.h.bf16 %v1476_v51  ;;  %v914_v32 = vsel %vm816_vm10, %v767_v6, %v865_v9  ;;  %v868_v11 = vmul.f32 0.2, %v770_v61 }
 0x151   :  { %v1040_v8 = vpop.permute.xlu1 %1039  ;;  %v1035_v25 = vpop.permute.xlu0 %1034  ;;  %v867_v57 = vmul.f32 0.2, %v769_v1  ;;  %v771_v21 = vadd.f32 %v2041_v35, %v428_v20  ;;  %vm818_vm12 = vcmp.gt.f32.partialorder %v769_v1, 0.0  ;;  %v772_v42 = vadd.f32 %v2053_v46, %v429_v14  ;;  %v1479_v46 = vld [vmem:[%s2350_s0 + $0x58] sm:$0xff]  }
 0x152   :  { %v1253_v16 = vmul.f32 %v1035_v25, %v910_v24  ;;  %v1300_v29 = vadd.f32 %v1299_v18, %v1252_v4  ;;  %v1254_v15 = vmul.f32 %v1040_v8, %v911_v23  ;;  %v915_v31 = vsel %vm817_vm11, %v768_v59, %v866_v39 }
 0x153   :  { %v1412_v8 = vunpack.c.h.bf16 %v1477_v62  ;;  %vm819_vm13 = vcmp.gt.f32.partialorder %v770_v61, 0.0  ;;  %v431_v6 = vmul.f32 %v1408_v12, %v1811_v36  ;;  %v869_v24 = vmul.f32 0.2, %v771_v21 }
 0x154   :  { %v1301_v50 = vadd.f32 %v1300_v29, %v1253_v16  ;;  %v773_v10 = vadd.f32 %v2051_v2, %v430_v47  ;;  %v916_v37 = vsel %vm818_vm12, %v769_v1, %v867_v57  ;;  %v1415_v33 = vunpack.c.l.bf16 %v1478_v54 }
 0x155   :  { %v1050_v58 = vpop.permute.xlu1 %1049  ;;  %v1045_v60 = vpop.permute.xlu0 %1044  ;;  %vm820_vm14 = vcmp.gt.f32.partialorder %v771_v21, 0.0  ;;  %v432_v23 = vmul.f32 %v1411_v52, %v1823_v41  ;;  %v870_v59 = vmul.f32 0.2, %v772_v42  ;;  %v774_v3 = vadd.f32 %v2063_v38, %v431_v6  ;;  %v1480_v38 = vld [vmem:[%s2350_s0 + $0x60] sm:$0xff]  }
 0x156   :  { %v1255_v55 = vmul.f32 %v1045_v60, %v912_v28  ;;  %v1302_v26 = vadd.f32 %v1301_v50, %v1254_v15  ;;  %v1256_v0 = vmul.f32 %v1050_v58, %v913_v27  ;;  %v917_v36 = vsel %vm819_vm13, %v770_v61, %v868_v11 }
 0x157   :  { %v1416_v15 = vunpack.c.h.bf16 %v1478_v54  ;;  %vm821_vm15 = vcmp.gt.f32.partialorder %v772_v42, 0.0  ;;  %v433_v17 = vmul.f32 %v1412_v8, %v1821_v40  ;;  %v871_v9 = vmul.f32 0.2, %v773_v10 }
 0x158   :  { %v1303_v5 = vadd.f32 %v1302_v26, %v1255_v55  ;;  %v775_v1 = vadd.f32 %v2061_v34, %v432_v23  ;;  %v918_v41 = vsel %vm820_vm14, %v771_v21, %v869_v24  ;;  %v1419_v28 = vunpack.c.l.bf16 %v1479_v46  ;;  %v2404_v23 = vld [vmem:[#allocation27_spill] sm:$0xff] }
 0x159   :  { %v1060_v56 = vpop.permute.xlu1 %1059  ;;  %v1055_v19 = vpop.permute.xlu0 %1054  ;;  %vm822_vm0 = vcmp.gt.f32.partialorder %v773_v10, 0.0  ;;  %v434_v26 = vmul.f32 %v1415_v33, %v1833_v45  ;;  %v872_v20 = vmul.f32 0.2, %v774_v3  ;;  %v776_v62 = vadd.f32 %v2073_v30, %v433_v17  ;;  %v1481_v30 = vld [vmem:[%s2350_s0 + $0x68] sm:$0xff]  }
 0x15a   :  { %v1257_v4 = vmul.f32 %v1055_v19, %v914_v32  ;;  %v1304_v18 = vadd.f32 %v1303_v5, %v1256_v0  ;;  %v1258_v25 = vmul.f32 %v1060_v56, %v915_v31  ;;  %v919_v40 = vsel %vm821_vm15, %v772_v42, %v870_v59  ;;  %v2403_v33 = vld [vmem:[#allocation3_spill] sm:$0xff] }
 0x15b   :  { %v1420_v39 = vunpack.c.h.bf16 %v1479_v46  ;;  %vm823_vm1 = vcmp.gt.f32.partialorder %v774_v3, 0.0  ;;  %v435_v27 = vmul.f32 %v1416_v15, %v1831_v44  ;;  %v873_v12 = vmul.f32 0.2, %v775_v1 }
 0x15c   :  { %v1305_v35 = vadd.f32 %v1304_v18, %v1257_v4  ;;  %v777_v0 = vadd.f32 %v2071_v13, %v434_v26  ;;  %v920_v45 = vsel %vm822_vm0, %v773_v10, %v871_v9  ;;  %v1423_v57 = vunpack.c.l.bf16 %v1480_v38  ;;  %v2402_v10 = vld [vmem:[#allocation28_spill] sm:$0xff]  ;;  %v1483_v9 = vld [vmem:[%s2350_s0 + $0x78] sm:$0xff]  }
 0x15d   :  { %v1070_v16 = vpop.permute.xlu1 %1069  ;;  %v1065_v29 = vpop.permute.xlu0 %1064  ;;  %vm824_vm2 = vcmp.gt.f32.partialorder %v775_v1, 0.0  ;;  %v436_v19 = vmul.f32 %v1419_v28, %v1843_v49  ;;  %v874_v32 = vmul.f32 0.2, %v776_v62  ;;  %v778_v52 = vadd.f32 %v2083_v22, %v435_v27  ;;  %v1482_v22 = vld [vmem:[%s2350_s0 + $0x70] sm:$0xff]  }
 0x15e   :  { %v1259_v51 = vmul.f32 %v1065_v29, %v916_v37  ;;  %v1306_v43 = vadd.f32 %v1305_v35, %v1258_v25  ;;  %v1260_v50 = vmul.f32 %v1070_v16, %v917_v36  ;;  %v921_v44 = vsel %vm823_vm1, %v774_v3, %v872_v20  ;;  %v2407_v26 = vld [vmem:[#allocation4_spill] sm:$0xff] }
 0x15f   :  { %v1424_v4 = vunpack.c.h.bf16 %v1480_v38  ;;  %vm825_vm3 = vcmp.gt.f32.partialorder %v776_v62, 0.0  ;;  %v437_v47 = vmul.f32 %v1420_v39, %v1841_v48  ;;  %v875_v54 = vmul.f32 0.2, %v777_v0 }
 0x160   :  { %v1307_v2 = vadd.f32 %v1306_v43, %v1259_v51  ;;  %v779_v11 = vadd.f32 %v2081_v63, %v436_v19  ;;  %v922_v49 = vsel %vm824_vm2, %v775_v1, %v873_v12  ;;  %v1427_v8 = vunpack.c.l.bf16 %v1481_v30 }
 0x161   :  { %v1080_v58 = vpop.permute.xlu1 %1079  ;;  %v1075_v60 = vpop.permute.xlu0 %1074  ;;  %vm826_vm4 = vcmp.gt.f32.partialorder %v777_v0, 0.0  ;;  %v438_v6 = vmul.f32 %v1423_v57, %v1853_v53  ;;  %v876_v24 = vmul.f32 0.2, %v778_v52  ;;  %v780_v16 = vadd.f32 %v2402_v10, %v437_v47 }
 0x162   :  { %v1261_v7 = vmul.f32 %v1075_v60, %v918_v41  ;;  %v1308_v55 = vadd.f32 %v1307_v2, %v1260_v50  ;;  %v1262_v61 = vmul.f32 %v1080_v58, %v919_v40  ;;  %v923_v48 = vsel %vm825_vm3, %v776_v62, %v874_v32  ;;  %v2405_v2 = vld [vmem:[#allocation5_spill] sm:$0xff]  ;;  %v2406_v58 = vld [vmem:[#allocation30_spill] sm:$0xff] }
 0x163   :  { %v1428_v29 = vunpack.c.h.bf16 %v1481_v30  ;;  %vm827_vm5 = vcmp.gt.f32.partialorder %v778_v52, 0.0  ;;  %v439_v51 = vmul.f32 %v1424_v4, %v2403_v33  ;;  %v877_v43 = vmul.f32 0.2, %v779_v11  ;;  %v2408_v62 = vld [vmem:[#allocation29_spill] sm:$0xff] }
 0x164   :  { %v1309_v34 = vadd.f32 %v1308_v55, %v1261_v7  ;;  %v781_v46 = vadd.f32 %v2404_v23, %v438_v6  ;;  %v924_v53 = vsel %vm826_vm4, %v777_v0, %v875_v54  ;;  %v1431_v36 = vunpack.c.l.bf16 %v1482_v22  ;;  %v1485_v6 = vld [vmem:[%s2350_s0 + $0x88] sm:$0xff]  }
 0x165   :  { %v1090_v5 = vpop.permute.xlu1 %1089  ;;  %v1085_v14 = vpop.permute.xlu0 %1084  ;;  %vm828_vm6 = vcmp.gt.f32.partialorder %v779_v11, 0.0  ;;  %v440_v17 = vmul.f32 %v1427_v8, %v2405_v2  ;;  %v878_v1 = vmul.f32 0.2, %v780_v16  ;;  %v782_v60 = vadd.f32 %v2406_v58, %v439_v51 }
 0x166   :  { %v1263_v21 = vmul.f32 %v1085_v14, %v920_v45  ;;  %v1310_v56 = vadd.f32 %v1309_v34, %v1262_v61  ;;  %v1264_v18 = vmul.f32 %v1090_v5, %v921_v44  ;;  %v925_v41 = vsel %vm827_vm5, %v778_v52, %v876_v24  ;;  %v2409_v5 = vld [vmem:[#allocation7_spill] sm:$0xff]  ;;  %v2411_v44 = vld [vmem:[#allocation6_spill] sm:$0xff] }
 0x167   :  { %v1432_v28 = vunpack.c.h.bf16 %v1482_v22  ;;  %vm829_vm7 = vcmp.gt.f32.partialorder %v780_v16, 0.0  ;;  %v441_v38 = vmul.f32 %v1428_v29, %v2407_v26  ;;  %v879_v20 = vmul.f32 0.2, %v781_v46  ;;  %v1484_v45 = vld [vmem:[%s2350_s0 + $0x80] sm:$0xff]  }
 0x168   :  { %v1311_v13 = vadd.f32 %v1310_v56, %v1263_v21  ;;  %v783_v40 = vadd.f32 %v2408_v62, %v440_v17  ;;  %v926_v34 = vsel %vm828_vm6, %v779_v11, %v877_v43  ;;  %v1435_v27 = vunpack.c.l.bf16 %v1483_v9  ;;  %v2410_v21 = vld [vmem:[#allocation32_spill] sm:$0xff]  ;;  %v2414_v24 = vld [vmem:[#allocation34_spill] sm:$0xff]  ;;  %v2416_v43 = vld [vmem:[#allocation33_spill] sm:$0xff] }
 0x169   :  { %v1100_v42 = vpop.permute.xlu1 %1099  ;;  %v1095_v31 = vpop.permute.xlu0 %1094  ;;  %vm830_vm8 = vcmp.gt.f32.partialorder %v781_v46, 0.0  ;;  %v442_v14 = vmul.f32 %v1431_v36, %v2409_v5  ;;  %v880_v57 = vmul.f32 0.2, %v782_v60  ;;  %v784_v56 = vadd.f32 %v2410_v21, %v441_v38  ;;  %v1486_v17 = vld [vmem:[%s2350_s0 + $0x90] sm:$0xff]  }
 0x16a   :  { %v1265_v25 = vmul.f32 %v1095_v31, %v922_v49  ;;  %v1312_v35 = vadd.f32 %v1311_v13, %v1264_v18  ;;  %v1266_v37 = vmul.f32 %v1100_v42, %v923_v48  ;;  %v927_v19 = vsel %vm829_vm7, %v780_v16, %v878_v1  ;;  %v2412_v13 = vld [vmem:[#allocation31_spill] sm:$0xff]  ;;  %v2418_v1 = vld [vmem:[#allocation36_spill] sm:$0xff] }
 0x16b   :  { %v1436_v30 = vunpack.c.h.bf16 %v1483_v9  ;;  %vm831_vm9 = vcmp.gt.f32.partialorder %v782_v60, 0.0  ;;  %v443_v4 = vmul.f32 %v1432_v28, %v2411_v44  ;;  %v881_v18 = vmul.f32 0.2, %v783_v40 }
 0x16c   :  { %v1313_v63 = vadd.f32 %v1312_v35, %v1265_v25  ;;  %v785_v47 = vadd.f32 %v2412_v13, %v442_v14  ;;  %v928_v42 = vsel %vm830_vm8, %v781_v46, %v879_v20  ;;  %v1439_v31 = vunpack.c.l.bf16 %v1484_v45  ;;  %v2413_v25 = vld [vmem:[#allocation9_spill] sm:$0xff]  ;;  %v2420_v20 = vld [vmem:[#allocation35_spill] sm:$0xff] }
 0x16d   :  { %v1110_v59 = vpop.permute.xlu1 %1109  ;;  %v1105_v3 = vpop.permute.xlu0 %1104  ;;  %vm832_vm10 = vcmp.gt.f32.partialorder %v783_v40, 0.0  ;;  %v444_v35 = vmul.f32 %v1435_v27, %v2413_v25  ;;  %v882_v22 = vmul.f32 0.2, %v784_v56  ;;  %v786_v10 = vadd.f32 %v2414_v24, %v443_v4  ;;  %v1487_v14 = vld [vmem:[%s2350_s0 + $0x98] sm:$0xff]  }
 0x16e   :  { %v1267_v15 = vmul.f32 %v1105_v3, %v924_v53  ;;  %v1314_v50 = vadd.f32 %v1313_v63, %v1266_v37  ;;  %v1268_v7 = vmul.f32 %v1110_v59, %v925_v41  ;;  %v929_v16 = vsel %vm831_vm9, %v782_v60, %v880_v57  ;;  %v2415_v63 = vld [vmem:[#allocation8_spill] sm:$0xff]  ;;  %v2422_v57 = vld [vmem:[#allocation38_spill] sm:$0xff] }
 0x16f   :  { %v1440_v48 = vunpack.c.h.bf16 %v1484_v45  ;;  %vm833_vm11 = vcmp.gt.f32.partialorder %v784_v56, 0.0  ;;  %v445_v33 = vmul.f32 %v1436_v30, %v2415_v63  ;;  %v883_v51 = vmul.f32 0.2, %v785_v47 }
 0x170   :  { %v1315_v55 = vadd.f32 %v1314_v50, %v1267_v15  ;;  %v787_v23 = vadd.f32 %v2416_v43, %v444_v35  ;;  %v930_v3 = vsel %vm832_vm10, %v783_v40, %v881_v18  ;;  %v1443_v53 = vunpack.c.l.bf16 %v1485_v6  ;;  %v2417_v50 = vld [vmem:[#allocation11_spill] sm:$0xff]  ;;  %v2424_v18 = vld [vmem:[#allocation37_spill] sm:$0xff] }
 0x171   :  { %v1120_v39 = vpop.permute.xlu1 %1119  ;;  %v1115_v61 = vpop.permute.xlu0 %1114  ;;  %vm834_vm12 = vcmp.gt.f32.partialorder %v785_v47, 0.0  ;;  %v446_v2 = vmul.f32 %v1439_v31, %v2417_v50  ;;  %v884_v9 = vmul.f32 0.2, %v786_v10  ;;  %v788_v58 = vadd.f32 %v2418_v1, %v445_v33  ;;  %v1488_v35 = vld [vmem:[%s2350_s0 + $0xa0] sm:$0xff]  }
 0x172   :  { %v1269_v12 = vmul.f32 %v1115_v61, %v926_v34  ;;  %v1316_v0 = vadd.f32 %v1315_v55, %v1268_v7  ;;  %v1270_v32 = vmul.f32 %v1120_v39, %v927_v19  ;;  %v931_v60 = vsel %vm833_vm11, %v784_v56, %v882_v22  ;;  %v2419_v55 = vld [vmem:[#allocation10_spill] sm:$0xff]  ;;  %v2426_v22 = vld [vmem:[#allocation40_spill] sm:$0xff] }
 0x173   :  { %v1444_v41 = vunpack.c.h.bf16 %v1485_v6  ;;  %vm835_vm13 = vcmp.gt.f32.partialorder %v786_v10, 0.0  ;;  %v447_v26 = vmul.f32 %v1440_v48, %v2419_v55  ;;  %v885_v38 = vmul.f32 0.2, %v787_v23 }
 0x174   :  { %v1317_v52 = vadd.f32 %v1316_v0, %v1269_v12  ;;  %v789_v62 = vadd.f32 %v2420_v20, %v446_v2  ;;  %v932_v61 = vsel %vm834_vm12, %v785_v47, %v883_v51  ;;  %v1447_v34 = vunpack.c.l.bf16 %v1486_v17  ;;  %v2421_v0 = vld [vmem:[#allocation13_spill] sm:$0xff]  ;;  %v2428_v51 = vld [vmem:[#allocation39_spill] sm:$0xff] }
 0x175   :  { %v1130_v54 = vpop.permute.xlu1 %1129  ;;  %v1125_v11 = vpop.permute.xlu0 %1124  ;;  %vm836_vm14 = vcmp.gt.f32.partialorder %v787_v23, 0.0  ;;  %v448_v5 = vmul.f32 %v1443_v53, %v2421_v0  ;;  %v886_v45 = vmul.f32 0.2, %v788_v58  ;;  %v790_v21 = vadd.f32 %v2422_v57, %v447_v26  ;;  %v1489_v2 = vld [vmem:[%s2350_s0 + $0xa8] sm:$0xff]  }
 0x176   :  { %v1271_v49 = vmul.f32 %v1125_v11, %v928_v42  ;;  %v1318_v8 = vadd.f32 %v1317_v52, %v1270_v32  ;;  %v1272_v29 = vmul.f32 %v1130_v54, %v929_v16  ;;  %v933_v56 = vsel %vm835_vm13, %v786_v10, %v884_v9  ;;  %v2423_v52 = vld [vmem:[#allocation12_spill] sm:$0xff]  ;;  %v2430_v9 = vld [vmem:[#allocation42_spill] sm:$0xff] }
 0x177   :  { %v1448_v19 = vunpack.c.h.bf16 %v1486_v17  ;;  %vm837_vm15 = vcmp.gt.f32.partialorder %v788_v58, 0.0  ;;  %v449_v44 = vmul.f32 %v1444_v41, %v2423_v52  ;;  %v887_v4 = vmul.f32 0.2, %v789_v62 }
 0x178   :  { %v1319_v37 = vadd.f32 %v1318_v8, %v1271_v49  ;;  %v791_v13 = vadd.f32 %v2424_v18, %v448_v5  ;;  %v934_v11 = vsel %vm836_vm14, %v787_v23, %v885_v38  ;;  %v1451_v42 = vunpack.c.l.bf16 %v1487_v14  ;;  %v2425_v8 = vld [vmem:[#allocation15_spill] sm:$0xff]  ;;  %v2432_v38 = vld [vmem:[#allocation41_spill] sm:$0xff] }
 0x179   :  { %v1140_v46 = vpop.permute.xlu1 %1139  ;;  %v1135_v59 = vpop.permute.xlu0 %1134  ;;  %vm838_vm0 = vcmp.gt.f32.partialorder %v789_v62, 0.0  ;;  %v450_v25 = vmul.f32 %v1447_v34, %v2425_v8  ;;  %v888_v6 = vmul.f32 0.2, %v790_v21  ;;  %v792_v24 = vadd.f32 %v2426_v22, %v449_v44  ;;  %v1490_v5 = vld [vmem:[%s2350_s0 + $0xb0] sm:$0xff]  }
 0x17a   :  { %v1273_v36 = vmul.f32 %v1135_v59, %v930_v3  ;;  %v1320_v15 = vadd.f32 %v1319_v37, %v1272_v29  ;;  %v1274_v28 = vmul.f32 %v1140_v46, %v931_v60  ;;  %v935_v10 = vsel %vm837_vm15, %v788_v58, %v886_v45  ;;  %v2427_v37 = vld [vmem:[#allocation14_spill] sm:$0xff]  ;;  %v2434_v45 = vld [vmem:[#allocation44_spill] sm:$0xff] }
 0x17b   :  { %v1452_v16 = vunpack.c.h.bf16 %v1487_v14  ;;  %vm839_vm1 = vcmp.gt.f32.partialorder %v790_v21, 0.0  ;;  %v451_v63 = vmul.f32 %v1448_v19, %v2427_v37  ;;  %v889_v33 = vmul.f32 0.2, %v791_v13 }
 0x17c   :  { %v1321_v7 = vadd.f32 %v1320_v15, %v1273_v36  ;;  %v793_v43 = vadd.f32 %v2428_v51, %v450_v25  ;;  %v936_v59 = vsel %vm838_vm0, %v789_v62, %v887_v4  ;;  %v1455_v3 = vunpack.c.l.bf16 %v1488_v35  ;;  %v2429_v15 = vld [vmem:[#allocation17_spill] sm:$0xff]  ;;  %v2436_v4 = vld [vmem:[#allocation43_spill] sm:$0xff] }
 0x17d   :  { %v1150_v40 = vpop.permute.xlu1 %1149  ;;  %v1145_v39 = vpop.permute.xlu0 %1144  ;;  %vm840_vm2 = vcmp.gt.f32.partialorder %v791_v13, 0.0  ;;  %v452_v50 = vmul.f32 %v1451_v42, %v2429_v15  ;;  %v890_v17 = vmul.f32 0.2, %v792_v24  ;;  %v794_v1 = vadd.f32 %v2430_v9, %v451_v63  ;;  %v1491_v25 = vld [vmem:[%s2350_s0 + $0xb8] sm:$0xff]  }
 0x17e   :  { %v1275_v27 = vmul.f32 %v1145_v39, %v932_v61  ;;  %v1322_v12 = vadd.f32 %v1321_v7, %v1274_v28  ;;  %v1276_v30 = vmul.f32 %v1150_v40, %v933_v56  ;;  %v937_v58 = vsel %vm839_vm1, %v790_v21, %v888_v6  ;;  %v2431_v7 = vld [vmem:[#allocation16_spill] sm:$0xff]  ;;  %v2438_v6 = vld [vmem:[#allocation46_spill] sm:$0xff] }
 0x17f   :  { %v1456_v60 = vunpack.c.h.bf16 %v1488_v35  ;;  %vm841_vm3 = vcmp.gt.f32.partialorder %v792_v24, 0.0  ;;  %v453_v55 = vmul.f32 %v1452_v16, %v2431_v7  ;;  %v891_v26 = vmul.f32 0.2, %v793_v43 }
 0x180   :  { %v1323_v32 = vadd.f32 %v1322_v12, %v1275_v27  ;;  %v795_v20 = vadd.f32 %v2432_v38, %v452_v50  ;;  %v938_v39 = vsel %vm840_vm2, %v791_v13, %v889_v33  ;;  %v1459_v61 = vunpack.c.l.bf16 %v1489_v2  ;;  %v2433_v12 = vld [vmem:[#allocation19_spill] sm:$0xff]  ;;  %v2440_v33 = vld [vmem:[#allocation45_spill] sm:$0xff] }
 0x181   :  { %v1160_v47 = vpop.permute.xlu1 %1159  ;;  %v1155_v54 = vpop.permute.xlu0 %1154  ;;  %vm842_vm4 = vcmp.gt.f32.partialorder %v793_v43, 0.0  ;;  %v454_v0 = vmul.f32 %v1455_v3, %v2433_v12  ;;  %v892_v14 = vmul.f32 0.2, %v794_v1  ;;  %v796_v57 = vadd.f32 %v2434_v45, %v453_v55  ;;  %v70_v50 = vld [vmem:[%s2350_s0 + $0xc0] sm:$0xf] }
 0x182   :  { %v1277_v31 = vmul.f32 %v1155_v54, %v934_v11  ;;  %v1324_v49 = vadd.f32 %v1323_v32, %v1276_v30  ;;  %v1278_v48 = vmul.f32 %v1160_v47, %v935_v10  ;;  %v939_v21 = vsel %vm841_vm3, %v792_v24, %v890_v17  ;;  %v2435_v32 = vld [vmem:[#allocation18_spill] sm:$0xff]  ;;  %v2442_v17 = vld [vmem:[#allocation48_spill] sm:$0xff] }
 0x183   :  { %v1460_v56 = vunpack.c.h.bf16 %v1489_v2  ;;  %vm843_vm5 = vcmp.gt.f32.partialorder %v794_v1, 0.0  ;;  %v455_v52 = vmul.f32 %v1456_v60, %v2435_v32  ;;  %v893_v44 = vmul.f32 0.2, %v795_v20  ;;  %v2448_v32 = vld [vmem:[#allocation49_spill] sm:$0xff] }
 0x184   :  { %v1325_v29 = vadd.f32 %v1324_v49, %v1277_v31  ;;  %v797_v18 = vadd.f32 %v2436_v4, %v454_v0  ;;  %v940_v54 = vsel %vm842_vm4, %v793_v43, %v891_v26  ;;  %v1463_v11 = vunpack.c.l.bf16 %v1490_v5  ;;  %v2437_v49 = vld [vmem:[#allocation21_spill] sm:$0xff]  ;;  %v2444_v26 = vld [vmem:[#allocation47_spill] sm:$0xff] }
 0x185   :  { %v1170_v23 = vpop.permute.xlu1 %1169  ;;  %v1165_v46 = vpop.permute.xlu0 %1164  ;;  %vm844_vm6 = vcmp.gt.f32.partialorder %v795_v20, 0.0  ;;  %v456_v8 = vmul.f32 %v1459_v61, %v2437_v49  ;;  %v894_v35 = vmul.f32 0.2, %v796_v57  ;;  %v798_v22 = vadd.f32 %v2438_v6, %v455_v52 }
 0x186   :  { %v1279_v53 = vmul.f32 %v1165_v46, %v936_v59  ;;  %v1326_v36 = vadd.f32 %v1325_v29, %v1278_v48  ;;  %v1280_v41 = vmul.f32 %v1170_v23, %v937_v58  ;;  %v941_v24 = vsel %vm843_vm5, %v794_v1, %v892_v14  ;;  %v2439_v29 = vld [vmem:[#allocation20_spill] sm:$0xff] }
 0x187   :  { %v1464_v10 = vunpack.c.h.bf16 %v1490_v5  ;;  %vm845_vm7 = vcmp.gt.f32.partialorder %v796_v57, 0.0  ;;  %v457_v37 = vmul.f32 %v1460_v56, %v2439_v29  ;;  %v895_v63 = vmul.f32 0.2, %v797_v18  ;;  %v2446_v5 = vld [vmem:[#allocation50_spill] sm:$0xff]  ;;  %v2447_v56 = vld [vmem:[#allocation24_spill] sm:$0xff] }
 0x188   :  { %v1327_v28 = vadd.f32 %v1326_v36, %v1279_v53  ;;  %v799_v51 = vadd.f32 %v2440_v33, %v456_v8  ;;  %v942_v46 = vsel %vm844_vm6, %v795_v20, %v893_v44  ;;  %v1467_v59 = vunpack.c.l.bf16 %v1491_v25  ;;  %v2441_v36 = vld [vmem:[#allocation23_spill] sm:$0xff] }
 0x189   :  { %v1180_v62 = vpop.permute.xlu1 %1179  ;;  %v1175_v40 = vpop.permute.xlu0 %1174  ;;  %vm846_vm8 = vcmp.gt.f32.partialorder %v797_v18, 0.0  ;;  %v458_v15 = vmul.f32 %v1463_v11, %v2441_v36  ;;  %v896_v2 = vmul.f32 0.2, %v798_v22  ;;  %v800_v9 = vadd.f32 %v2442_v17, %v457_v37 }
 0x18a   :  { %v1281_v34 = vmul.f32 %v1175_v40, %v938_v39  ;;  %v1328_v27 = vadd.f32 %v1327_v28, %v1280_v41  ;;  %v1282_v19 = vmul.f32 %v1180_v62, %v939_v21  ;;  %v943_v1 = vsel %vm845_vm7, %v796_v57, %v894_v35  ;;  %v2443_v28 = vld [vmem:[#allocation22_spill] sm:$0xff] }
 0x18b   :  { %v1468_v58 = vunpack.c.h.bf16 %v1491_v25  ;;  %vm847_vm9 = vcmp.gt.f32.partialorder %v798_v22, 0.0  ;;  %v459_v7 = vmul.f32 %v1464_v10, %v2443_v28  ;;  %v897_v55 = vmul.f32 0.2, %v799_v51 }
 0x18c   :  { %v1329_v30 = vadd.f32 %v1328_v27, %v1281_v34  ;;  %v801_v38 = vadd.f32 %v2444_v26, %v458_v15  ;;  %v944_v40 = vsel %vm846_vm8, %v797_v18, %v895_v63  ;;  %v119_v39 = vunpack.c.l.bf16 %v70_v50  ;;  %v2445_v27 = vld [vmem:[#allocation25_spill] sm:$0xff] }
 0x18d   :  { %v1190_v13 = vpop.permute.xlu1 %1189  ;;  %v1185_v47 = vpop.permute.xlu0 %1184  ;;  %vm848_vm10 = vcmp.gt.f32.partialorder %v799_v51, 0.0  ;;  %v460_v12 = vmul.f32 %v1467_v59, %v2445_v27  ;;  %v898_v0 = vmul.f32 0.2, %v800_v9  ;;  %v802_v14 = vadd.f32 %v2446_v5, %v459_v7 }
 0x18e   :  { %v1283_v42 = vmul.f32 %v1185_v47, %v940_v54  ;;  %v1330_v31 = vadd.f32 %v1329_v30, %v1282_v19  ;;  %v1284_v16 = vmul.f32 %v1190_v13, %v941_v24  ;;  %v945_v45 = vsel %vm847_vm9, %v798_v22, %v896_v2  ;;  %v2449_v54 = vld [vmem:[#allocation26_spill] sm:$0xff]  ;;  %v2451_v22 = vld [vmem:[#allocation51_spill] sm:$0xff] }
 0x18f   :  { %vm849_vm11 = vcmp.gt.f32.partialorder %v800_v9, 0.0  ;;  %v461_v19 = vmul.f32 %v1468_v58, %v2447_v56  ;;  %v899_v30 = vmul.f32 0.2, %v801_v38  ;;  %v803_v52 = vadd.f32 %v2448_v32, %v460_v12 }
 0x190   :  { %v1331_v48 = vadd.f32 %v1330_v31, %v1283_v42  ;;  %v946_v18 = vsel %vm848_vm10, %v799_v51, %v897_v55  ;;  %vm850_vm12 = vcmp.gt.f32.partialorder %v801_v38, 0.0  ;;  %v462_v11 = vmul.f32 %v2449_v54, %v119_v39  ;;  %v2450_v31 = vld [vmem:[#allocation52_spill] sm:$0xff] }
 0x191   :  { %v1200_v43 = vpop.permute.xlu1 %1199  ;;  %v1195_v23 = vpop.permute.xlu0 %1194  ;;  %v900_v42 = vmul.f32 0.2, %v802_v14  ;;  %v804_v49 = vadd.f32 %v2450_v31, %v461_v19  ;;  %v947_v8 = vsel %vm849_vm11, %v800_v9, %v898_v0  ;;  %vm851_vm13 = vcmp.gt.f32.partialorder %v802_v14, 0.0 }
 0x192   :  { %v1285_v3 = vmul.f32 %v1195_v23, %v942_v46  ;;  %v1332_v53 = vadd.f32 %v1331_v48, %v1284_v16  ;;  %v1286_v60 = vmul.f32 %v1200_v43, %v943_v1  ;;  %v901_v6 = vmul.f32 0.2, %v803_v52 }
 0x193   :  { %v805_v24 = vadd.f32 %v2451_v22, %v462_v11  ;;  %v948_v48 = vsel %vm850_vm12, %v801_v38, %v899_v30  ;;  %vm852_vm14 = vcmp.gt.f32.partialorder %v803_v52, 0.0  ;;  %v902_v63 = vmul.f32 0.2, %v804_v49 }
 0x194   :  { %v1333_v41 = vadd.f32 %v1332_v53, %v1285_v3  ;;  %v949_v33 = vsel %vm851_vm13, %v802_v14, %v900_v42  ;;  %vm853_vm15 = vcmp.gt.f32.partialorder %v804_v49, 0.0  ;;  %v950_v3 = vsel %vm852_vm14, %v803_v52, %v901_v6 }
 0x195   :  { %v1210_v20 = vpop.permute.xlu1 %1209  ;;  %v1205_v62 = vpop.permute.xlu0 %1204  ;;  %v903_v23 = vmul.f32 0.2, %v805_v24  ;;  %vm854_vm0 = vcmp.gt.f32.partialorder %v805_v24, 0.0  ;;  %v951_v15 = vsel %vm853_vm15, %v804_v49, %v902_v63 }
 0x196   :  { %v1287_v61 = vmul.f32 %v1205_v62, %v944_v40  ;;  %v1334_v34 = vadd.f32 %v1333_v41, %v1286_v60  ;;  %v1288_v57 = vmul.f32 %v1210_v20, %v945_v45  ;;  %v1356_v60 = vlaneseq }
 0x197   :  { %v952_v9 = vsel %vm854_vm0, %v805_v24, %v903_v23 }
 0x198   :  { %v1335_v21 = vadd.f32 %v1334_v34, %v1287_v61  ;;  %v1357_v7 = vshrl.u32 %v1356_v60, 7 }
 0x199   :  { %v1220_v44 = vpop.permute.xlu1 %1219  ;;  %v1215_v4 = vpop.permute.xlu0 %1214 }
 0x19a   :  { %v1289_v13 = vmul.f32 %v1215_v4, %v946_v18  ;;  %v1336_v47 = vadd.f32 %v1335_v21, %v1288_v57  ;;  %v1290_v25 = vmul.f32 %v1220_v44, %v947_v8  ;;  %v1358_v38 = vsub.s32 0, %v1357_v7 }
 0x19c   :  { %v1337_v35 = vadd.f32 %v1336_v47, %v1289_v13 }
 0x19d   :  { %v1230_v10 = vpop.permute.xlu1 %1229  ;;  %v1225_v16 = vpop.permute.xlu0 %1224 }
 0x19e   :  { %v1291_v29 = vmul.f32 %v1225_v16, %v948_v48  ;;  %v1338_v37 = vadd.f32 %v1337_v35, %v1290_v25  ;;  %v1292_v51 = vmul.f32 %v1230_v10, %v949_v33 }
 0x1a0   :  { %v1339_v43 = vadd.f32 %v1338_v37, %v1291_v29 }
 0x1a1   :  { %v1240_v46 = vpop.permute.xlu1 %1239  ;;  %v1235_v59 = vpop.permute.xlu0 %1234 }
 0x1a2   :  { %v1293_v53 = vmul.f32 %v1235_v59, %v950_v3  ;;  %v1340_v36 = vadd.f32 %v1339_v43, %v1292_v51  ;;  %v1294_v50 = vmul.f32 %v1240_v46, %v951_v15 }
 0x1a4   :  { %v1341_v2 = vadd.f32 %v1340_v36, %v1293_v53 }
 0x1a5   :  { %v1245_v17 = vpop.permute.xlu0 %1244  ;;  %v1354_v62 = vpop.permute.xlu1 %1353 }
 0x1a6   :  { %v1295_v1 = vmul.f32 %v1245_v17, %v952_v9  ;;  %v1342_v58 = vadd.f32 %v1341_v2, %v1294_v50  ;;  %v1359_v39 = vrot.slane %v1354_v62, %v1358_v38 }
 0x1a8   :  { %v1343_v41 = vadd.f32 %v1342_v58, %v1295_v1 }
 0x1aa   :  { %v1344_v28 = vrot.slane %v1343_v41, 4 }
 0x1ac   :  { %v1345_v55 = vadd.f32 %v1344_v28, %v1343_v41 }
 0x1ae   :  { %v1346_v26 = vrot.slane %v1345_v55, 2 }
 0x1b0   :  { %v1347_v20 = vadd.f32 %v1346_v26, %v1345_v55 }
 0x1b2   :  { %v1348_v40 = vrot.slane %v1347_v20, 1 }
 0x1b4   :  { %v1349_v61 = vadd.f32 %v1348_v40, %v1347_v20 }
 0x1b6   :  { %v1360_v34 = vadd.f32 %v1359_v39, %v1349_v61 }
 0x1b8   :  { %v1372_v27 = vmul.f32 -1.442695, %v1360_v34 }
 0x1ba   :  { %1495 = vpow2.f32 %v1372_v27 }
 0x1c4   :  { %v1496_v12 = vpop.eup %1495 }
 0x1c5   :  { %v1364_v0 = vadd.f32 1.0, %v1496_v12 }
 0x1c7   :  { %1497 = vrcp.f32 %v1364_v0 }
 0x1d1   :  { %v1498_v5 = vpop.eup %1497 }
 0x1d2   :  { %1367 = vst [vmem:[%s2351_s5] sm:$0x1] %v1498_v5 }

</bundles_post_ra>
